<compile_context>
chip_gen: v7x
topology: tpu7x:2x2x1
jax: 0.10.0
libtpu: 0.0.40
codegen_flags: <defaults>
</compile_context>

<pallas_src>
from functools import partial

import jax
import jax.numpy as jnp
from jax import lax
from jax.experimental import pallas as pl
from jax.experimental.pallas import tpu as pltpu


def _largest_divisor_leq(n, cap):
    cap = max(1, min(n, cap))
    for d in range(cap, 0, -1):
        if n % d == 0:
            return d
    return 1


def security_attention_kernel(x_ref, sec_ref,
                              wqkv_ref, bqkv_ref,
                              wsec_ref, bsec_ref,
                              wout_ref, bout_ref,
                              out_ref, probs_ref,
                              ctx_ref,
                              *, num_heads, head_dim, batch_tile, num_nodes):
    H = num_heads * head_dim
    N = num_nodes
    M = batch_tile * N
    S = sec_ref.shape[-1]
    inv_sqrt_d = 1.0 / (float(head_dim) ** 0.5)

    # ---- fused QKV projection over all batch_tile * N rows: one wide MXU matmul ----
    x2 = x_ref[...].reshape(M, H).astype(jnp.bfloat16)                     # [M, H]
    qkv = jnp.dot(x2, wqkv_ref[...],
                  preferred_element_type=jnp.float32) + bqkv_ref[...]      # [M, 3H] f32

    # Fold 1/sqrt(d) into Q (and into the security bias below) instead of scaling
    # the full [N, N] score matrix for every head.
    q = (qkv[:, 0 * H:1 * H] * inv_sqrt_d).astype(jnp.bfloat16)            # [M, H]
    k = qkv[:, 1 * H:2 * H].astype(jnp.bfloat16)                           # [M, H]
    v = qkv[:, 2 * H:3 * H].astype(jnp.bfloat16)                           # [M, H]

    # ---- per-query security bias (broadcast over keys), pre-scaled by 1/sqrt(d) ----
    sec2 = sec_ref[...].reshape(M, S).astype(jnp.bfloat16)
    sec_bias = (jnp.dot(sec2, wsec_ref[...],
                        preferred_element_type=jnp.float32)
                + bsec_ref[...]) * inv_sqrt_d                              # [M, num_heads]

    # ---- attention: static loop over (batch element in tile, head) ----
    # NOTE: heads kept as a static unrolled loop (head_dim-wide slices) for robust
    # Mosaic lowering; the concatenate is gone — each head writes straight into the
    # VMEM ctx scratch slab, bounding live ranges.
    for b in range(batch_tile):
        r0 = b * N
        for h in range(num_heads):
            lo = h * head_dim
            qh = q[r0:r0 + N, lo:lo + head_dim]                            # [N, hd] bf16
            kh = k[r0:r0 + N, lo:lo + head_dim]
            vh = v[r0:r0 + N, lo:lo + head_dim]

            # scores = (Q K^T + bias) / sqrt(d)   (scale already folded into q & bias)
            s = lax.dot_general(qh, kh, (((1,), (1,)), ((), ())),
                                preferred_element_type=jnp.float32)        # [N, N] f32
            s = s + sec_bias[r0:r0 + N, h:h + 1]

            m = jnp.max(s, axis=-1, keepdims=True)
            e = jnp.exp(s - m)
            denom = jnp.sum(e, axis=-1, keepdims=True)
            p = e * pl.reciprocal(denom, approx=True)                      # softmax (keys)

            # TODO(synk): for large N, pad the key dim of probs to a multiple of 128
            # (or skip/emit bf16 probs) to get unmasked lane-dense stores.
            probs_ref[b, h, :, :] = p
            ctx_ref[r0:r0 + N, lo:lo + head_dim] = jnp.dot(
                p.astype(jnp.bfloat16), vh, preferred_element_type=jnp.float32)

    # ---- output projection over all rows in a single matmul ----
    out = jnp.dot(ctx_ref[...].astype(jnp.bfloat16), wout_ref[...],
                  preferred_element_type=jnp.float32) + bout_ref[...]      # [M, H]
    out_ref[...] = out.reshape(batch_tile, N, H).astype(out_ref.dtype)


def security_aware_attention(x, sec, params, num_heads, *,
                             batch_tile=None, target_rows=256):
    B, N, H = x.shape
    S = sec.shape[-1]
    head_dim = H // num_heads
    assert head_dim * num_heads == H, "hidden_dim must be divisible by num_heads"

    if batch_tile is None:
        # Fill the MXU M dimension with ~target_rows rows per grid step.
        # (On v7x with tiny B, pass batch_tile=1 instead to keep both TensorCores busy.)
        batch_tile = _largest_divisor_leq(B, max(1, target_rows // max(N, 1)))
    assert B % batch_tile == 0
    grid_b = B // batch_tile

    # Fused QKV weights/bias; MXU operands pre-cast to bf16 in the wrapper so the
    # weight DMA moves half the bytes. Biases stay f32 (added after f32 accumulation).
    wqkv = jnp.concatenate([params["wq"], params["wk"], params["wv"]],
                           axis=1).astype(jnp.bfloat16)                    # [H, 3H]
    bqkv = jnp.concatenate([params["bq"], params["bk"], params["bv"]],
                           axis=1).astype(jnp.float32)                     # [1, 3H]
    wsec = params["wsec"].astype(jnp.bfloat16)
    bsec = params["bsec"].astype(jnp.float32)
    wout = params["wout"].astype(jnp.bfloat16)
    bout = params["bout"].astype(jnp.float32)

    kernel = partial(security_attention_kernel, num_heads=num_heads,
                     head_dim=head_dim, batch_tile=batch_tile, num_nodes=N)

    def const_spec(shape):
        # Full-array block, constant across the grid. (For very large H these should
        # be single-buffered; at these sizes the second buffer is negligible.)
        return pl.BlockSpec(shape, lambda i: (0,) * len(shape))

    out, probs = pl.pallas_call(
        kernel,
        grid=(grid_b,),
        in_specs=[
            pl.BlockSpec((batch_tile, N, H), lambda i: (i, 0, 0)),         # node feats
            pl.BlockSpec((batch_tile, N, S), lambda i: (i, 0, 0)),         # security feats
            const_spec((H, 3 * H)), const_spec((1, 3 * H)),                # fused W_qkv, b_qkv
            const_spec((S, num_heads)), const_spec((1, num_heads)),        # security_bias_proj
            const_spec((H, H)), const_spec((1, H)),                        # out_proj
        ],
        out_specs=[
            pl.BlockSpec((batch_tile, N, H), lambda i: (i, 0, 0)),
            pl.BlockSpec((batch_tile, num_heads, N, N), lambda i: (i, 0, 0, 0)),
        ],
        out_shape=[
            jax.ShapeDtypeStruct((B, N, H), jnp.float32),
            jax.ShapeDtypeStruct((B, num_heads, N, N), jnp.float32),
        ],
        scratch_shapes=[pltpu.VMEM((batch_tile * N, H), jnp.float32)],     # ctx slab
        compiler_params=pltpu.CompilerParams(
            dimension_semantics=("parallel",),
            vmem_limit_bytes=32 * 1024 * 1024,   # explicit budget; re-derive for large N/H
        ),
    )(x, sec, wqkv, bqkv, wsec, bsec, wout, bout)
    return out, probs


def reference(x, sec, p, num_heads):
    # Pure-JAX (f32) replica of the PyTorch forward, for correctness checking.
    B, N, H = x.shape
    hd = H // num_heads
    q = (x @ p["wq"] + p["bq"]).reshape(B, N, num_heads, hd).transpose(0, 2, 1, 3)
    k = (x @ p["wk"] + p["bk"]).reshape(B, N, num_heads, hd).transpose(0, 2, 1, 3)
    v = (x @ p["wv"] + p["bv"]).reshape(B, N, num_heads, hd).transpose(0, 2, 1, 3)
    scores = jnp.einsum("bhqd,bhkd->bhqk", q, k)
    bias = (sec @ p["wsec"] + p["bsec"]).transpose(0, 2, 1)[..., None]
    scores = scores + bias
    probs = jax.nn.softmax(scores / hd ** 0.5, axis=-1)
    ctx = jnp.einsum("bhqk,bhkd->bhqd", probs, v).transpose(0, 2, 1, 3).reshape(B, N, H)
    out = ctx @ p["wout"] + p["bout"]
    return out, probs


def init_params(key, hidden_dim, num_heads, security_feature_dim):
    ks = jax.random.split(key, 10)
    def w(k, i, o):
        return jax.random.normal(k, (i, o), jnp.float32) * 0.05
    return {
        "wq": w(ks[0], hidden_dim, hidden_dim), "bq": w(ks[1], 1, hidden_dim),
        "wk": w(ks[2], hidden_dim, hidden_dim), "bk": w(ks[3], 1, hidden_dim),
        "wv": w(ks[4], hidden_dim, hidden_dim), "bv": w(ks[5], 1, hidden_dim),
        "wsec": w(ks[6], security_feature_dim, num_heads), "bsec": w(ks[7], 1, num_heads),
        "wout": w(ks[8], hidden_dim, hidden_dim), "bout": w(ks[9], 1, hidden_dim),
    }


if __name__ == "__main__":
    B, N, H = 2, 8, 32          # batch, num_nodes, hidden_dim
    num_heads = 4               # head_dim = 8
    S = 8                       # security_feature_dim

    key = jax.random.PRNGKey(0)
    kx, ks, kp = jax.random.split(key, 3)
    node_features = jax.random.normal(kx, (B, N, H), jnp.float32)
    security_features = jax.random.normal(ks, (B, N, S), jnp.float32)
    params = init_params(kp, H, num_heads, S)

    out, probs = security_aware_attention(node_features, security_features, params, num_heads)
    out = jax.block_until_ready(out)
    probs = jax.block_until_ready(probs)

    ref_out, ref_probs = reference(node_features, security_features, params, num_heads)
    assert out.shape == (B, N, H) and probs.shape == (B, num_heads, N, N)
    # bf16 MXU operands + approx reciprocal -> relaxed tolerances vs the f32 reference.
    assert jnp.allclose(out, ref_out, atol=2e-2, rtol=2e-2)
    assert jnp.allclose(probs, ref_probs, atol=2e-2, rtol=2e-2)

    print("KERNEL_OK")
</pallas_src>

<mosaic_0001>
module attributes {stable_mosaic.version = 11 : i64} {
  func.func @security_attention_kernel(%arg0: i32, %arg1: memref<2x8x32xf32, #tpu.memory_space<vmem>>, %arg2: memref<2x8x8xf32, #tpu.memory_space<vmem>>, %arg3: memref<32x96xbf16, #tpu.memory_space<vmem>>, %arg4: memref<1x96xf32, #tpu.memory_space<vmem>>, %arg5: memref<8x4xbf16, #tpu.memory_space<vmem>>, %arg6: memref<1x4xf32, #tpu.memory_space<vmem>>, %arg7: memref<32x32xbf16, #tpu.memory_space<vmem>>, %arg8: memref<1x32xf32, #tpu.memory_space<vmem>>, %arg9: memref<2x8x32xf32, #tpu.memory_space<vmem>>, %arg10: memref<2x4x8x8xf32, #tpu.memory_space<vmem>>, %arg11: memref<16x32xf32, #tpu.memory_space<vmem>>) attributes {dimension_semantics = [#tpu.dimension_semantics<parallel>], iteration_bounds = array<i64: 1>, scalar_prefetch = 0 : i64, scratch_operands = 1 : i64, tpu.core_type = #tpu.core_type<tc>, window_params = [{transform_indices = @transform_0, window_bounds = array<i64: 2, 8, 32>}, {transform_indices = @transform_1, window_bounds = array<i64: 2, 8, 8>}, {pipeline_mode = #tpu.pipeline_mode<synchronous>, transform_indices = @transform_2, window_bounds = array<i64: 32, 96>}, {pipeline_mode = #tpu.pipeline_mode<synchronous>, transform_indices = @transform_3, window_bounds = array<i64: 1, 96>}, {pipeline_mode = #tpu.pipeline_mode<synchronous>, transform_indices = @transform_4, window_bounds = array<i64: 8, 4>}, {pipeline_mode = #tpu.pipeline_mode<synchronous>, transform_indices = @transform_5, window_bounds = array<i64: 1, 4>}, {pipeline_mode = #tpu.pipeline_mode<synchronous>, transform_indices = @transform_6, window_bounds = array<i64: 32, 32>}, {pipeline_mode = #tpu.pipeline_mode<synchronous>, transform_indices = @transform_7, window_bounds = array<i64: 1, 32>}, {transform_indices = @transform_8, window_bounds = array<i64: 2, 8, 32>}, {transform_indices = @transform_9, window_bounds = array<i64: 2, 4, 8, 8>}]} {
    %c0 = arith.constant 0 : index
    %c0_0 = arith.constant 0 : index
    %c0_1 = arith.constant 0 : index
    %0 = vector.load %arg1[%c0, %c0_0, %c0_1] : memref<2x8x32xf32, #tpu.memory_space<vmem>>, vector<2x8x32xf32>
    %1 = vector.shape_cast %0 : vector<2x8x32xf32> to vector<16x32xf32>
    %2 = arith.truncf %1 : vector<16x32xf32> to vector<16x32xbf16>
    %c0_2 = arith.constant 0 : index
    %c0_3 = arith.constant 0 : index
    %3 = vector.load %arg3[%c0_2, %c0_3] : memref<32x96xbf16, #tpu.memory_space<vmem>>, vector<32x96xbf16>
    %cst = arith.constant dense<0.000000e+00> : vector<16x96xf32>
    %4 = tpu.matmul %2, %3, %cst {dimension_numbers = #tpu.dot_dimension_numbers<[1], [0], [0], [1], [0, 0, 1, 1], [], []>} : vector<16x32xbf16>, vector<32x96xbf16>, vector<16x96xf32> -> vector<16x96xf32>
    %c0_4 = arith.constant 0 : index
    %c0_5 = arith.constant 0 : index
    %5 = vector.load %arg4[%c0_4, %c0_5] : memref<1x96xf32, #tpu.memory_space<vmem>>, vector<1x96xf32>
    %6 = vector.broadcast %5 : vector<1x96xf32> to vector<16x96xf32>
    %7 = arith.addf %4, %6 : vector<16x96xf32>
    %8 = vector.extract_strided_slice %7 {offsets = [0, 0], sizes = [16, 32], strides = [1, 1]} : vector<16x96xf32> to vector<16x32xf32>
    %cst_6 = arith.constant 0.353553385 : f32
    %9 = vector.broadcast %cst_6 : f32 to vector<16x32xf32>
    %10 = arith.mulf %8, %9 : vector<16x32xf32>
    %11 = arith.truncf %10 : vector<16x32xf32> to vector<16x32xbf16>
    %12 = vector.extract_strided_slice %7 {offsets = [0, 32], sizes = [16, 32], strides = [1, 1]} : vector<16x96xf32> to vector<16x32xf32>
    %13 = arith.truncf %12 : vector<16x32xf32> to vector<16x32xbf16>
    %14 = vector.extract_strided_slice %7 {offsets = [0, 64], sizes = [16, 32], strides = [1, 1]} : vector<16x96xf32> to vector<16x32xf32>
    %15 = arith.truncf %14 : vector<16x32xf32> to vector<16x32xbf16>
    %c0_7 = arith.constant 0 : index
    %c0_8 = arith.constant 0 : index
    %c0_9 = arith.constant 0 : index
    %16 = vector.load %arg2[%c0_7, %c0_8, %c0_9] : memref<2x8x8xf32, #tpu.memory_space<vmem>>, vector<2x8x8xf32>
    %17 = vector.shape_cast %16 : vector<2x8x8xf32> to vector<16x8xf32>
    %18 = arith.truncf %17 : vector<16x8xf32> to vector<16x8xbf16>
    %c0_10 = arith.constant 0 : index
    %c0_11 = arith.constant 0 : index
    %19 = vector.load %arg5[%c0_10, %c0_11] : memref<8x4xbf16, #tpu.memory_space<vmem>>, vector<8x4xbf16>
    %cst_12 = arith.constant dense<0.000000e+00> : vector<16x4xf32>
    %20 = tpu.matmul %18, %19, %cst_12 {dimension_numbers = #tpu.dot_dimension_numbers<[1], [0], [0], [1], [0, 0, 1, 1], [], []>} : vector<16x8xbf16>, vector<8x4xbf16>, vector<16x4xf32> -> vector<16x4xf32>
    %c0_13 = arith.constant 0 : index
    %c0_14 = arith.constant 0 : index
    %21 = vector.load %arg6[%c0_13, %c0_14] : memref<1x4xf32, #tpu.memory_space<vmem>>, vector<1x4xf32>
    %22 = vector.broadcast %21 : vector<1x4xf32> to vector<16x4xf32>
    %23 = arith.addf %20, %22 : vector<16x4xf32>
    %cst_15 = arith.constant 0.353553385 : f32
    %24 = vector.broadcast %cst_15 : f32 to vector<16x4xf32>
    %25 = arith.mulf %23, %24 : vector<16x4xf32>
    %26 = vector.extract_strided_slice %11 {offsets = [0, 0], sizes = [8, 8], strides = [1, 1]} : vector<16x32xbf16> to vector<8x8xbf16>
    %27 = vector.extract_strided_slice %13 {offsets = [0, 0], sizes = [8, 8], strides = [1, 1]} : vector<16x32xbf16> to vector<8x8xbf16>
    %28 = vector.extract_strided_slice %15 {offsets = [0, 0], sizes = [8, 8], strides = [1, 1]} : vector<16x32xbf16> to vector<8x8xbf16>
    %cst_16 = arith.constant dense<0.000000e+00> : vector<8x8xf32>
    %29 = tpu.matmul %26, %27, %cst_16 {dimension_numbers = #tpu.dot_dimension_numbers<[1], [1], [0], [0], [0, 0, 1, 0], [], []>} : vector<8x8xbf16>, vector<8x8xbf16>, vector<8x8xf32> -> vector<8x8xf32>
    %30 = vector.extract_strided_slice %25 {offsets = [0, 0], sizes = [8, 1], strides = [1, 1]} : vector<16x4xf32> to vector<8x1xf32>
    %31 = vector.broadcast %30 : vector<8x1xf32> to vector<8x8xf32>
    %32 = arith.addf %29, %31 : vector<8x8xf32>
    %cst_17 = arith.constant dense<0xFF800000> : vector<8xf32>
    %33 = vector.multi_reduction <maximumf>, %32, %cst_17 [1] : vector<8x8xf32> to vector<8xf32>
    %34 = vector.shape_cast %33 : vector<8xf32> to vector<8x1xf32>
    %35 = vector.broadcast %34 : vector<8x1xf32> to vector<8x8xf32>
    %36 = arith.subf %32, %35 : vector<8x8xf32>
    %37 = math.exp %36 : vector<8x8xf32>
    %cst_18 = arith.constant dense<0.000000e+00> : vector<8xf32>
    %38 = vector.multi_reduction <add>, %37, %cst_18 [1] : vector<8x8xf32> to vector<8xf32>
    %39 = vector.shape_cast %38 : vector<8xf32> to vector<8x1xf32>
    %40 = tpu.reciprocal %39 {approx = true} : vector<8x1xf32> -> vector<8x1xf32>
    %41 = vector.broadcast %40 : vector<8x1xf32> to vector<8x8xf32>
    %42 = arith.mulf %37, %41 : vector<8x8xf32>
    %c0_19 = arith.constant 0 : index
    %c0_20 = arith.constant 0 : index
    %c0_21 = arith.constant 0 : index
    %c0_22 = arith.constant 0 : index
    %43 = vector.load %arg10[%c0_19, %c0_20, %c0_21, %c0_22] : memref<2x4x8x8xf32, #tpu.memory_space<vmem>>, vector<1x1x8x8xf32>
    %44 = vector.shape_cast %43 : vector<1x1x8x8xf32> to vector<8x8xf32>
    %45 = vector.shape_cast %42 : vector<8x8xf32> to vector<1x1x8x8xf32>
    tpu.vector_store %arg10[%c0_19, %c0_20, %c0_21, %c0_22], %45 {strides = array<i32>} : memref<2x4x8x8xf32, #tpu.memory_space<vmem>>, vector<1x1x8x8xf32>,
    %46 = arith.truncf %42 : vector<8x8xf32> to vector<8x8xbf16>
    %cst_23 = arith.constant dense<0.000000e+00> : vector<8x8xf32>
    %47 = tpu.matmul %46, %28, %cst_23 {dimension_numbers = #tpu.dot_dimension_numbers<[1], [0], [0], [1], [0, 0, 1, 1], [], []>} : vector<8x8xbf16>, vector<8x8xbf16>, vector<8x8xf32> -> vector<8x8xf32>
    %c0_24 = arith.constant 0 : index
    %c0_25 = arith.constant 0 : index
    %48 = vector.load %arg11[%c0_24, %c0_25] : memref<16x32xf32, #tpu.memory_space<vmem>>, vector<8x8xf32>
    tpu.vector_store %arg11[%c0_24, %c0_25], %47 {strides = array<i32>} : memref<16x32xf32, #tpu.memory_space<vmem>>, vector<8x8xf32>,
    %49 = vector.extract_strided_slice %11 {offsets = [0, 8], sizes = [8, 8], strides = [1, 1]} : vector<16x32xbf16> to vector<8x8xbf16>
    %50 = vector.extract_strided_slice %13 {offsets = [0, 8], sizes = [8, 8], strides = [1, 1]} : vector<16x32xbf16> to vector<8x8xbf16>
    %51 = vector.extract_strided_slice %15 {offsets = [0, 8], sizes = [8, 8], strides = [1, 1]} : vector<16x32xbf16> to vector<8x8xbf16>
    %cst_26 = arith.constant dense<0.000000e+00> : vector<8x8xf32>
    %52 = tpu.matmul %49, %50, %cst_26 {dimension_numbers = #tpu.dot_dimension_numbers<[1], [1], [0], [0], [0, 0, 1, 0], [], []>} : vector<8x8xbf16>, vector<8x8xbf16>, vector<8x8xf32> -> vector<8x8xf32>
    %53 = vector.extract_strided_slice %25 {offsets = [0, 1], sizes = [8, 1], strides = [1, 1]} : vector<16x4xf32> to vector<8x1xf32>
    %54 = vector.broadcast %53 : vector<8x1xf32> to vector<8x8xf32>
    %55 = arith.addf %52, %54 : vector<8x8xf32>
    %cst_27 = arith.constant dense<0xFF800000> : vector<8xf32>
    %56 = vector.multi_reduction <maximumf>, %55, %cst_27 [1] : vector<8x8xf32> to vector<8xf32>
    %57 = vector.shape_cast %56 : vector<8xf32> to vector<8x1xf32>
    %58 = vector.broadcast %57 : vector<8x1xf32> to vector<8x8xf32>
    %59 = arith.subf %55, %58 : vector<8x8xf32>
    %60 = math.exp %59 : vector<8x8xf32>
    %cst_28 = arith.constant dense<0.000000e+00> : vector<8xf32>
    %61 = vector.multi_reduction <add>, %60, %cst_28 [1] : vector<8x8xf32> to vector<8xf32>
    %62 = vector.shape_cast %61 : vector<8xf32> to vector<8x1xf32>
    %63 = tpu.reciprocal %62 {approx = true} : vector<8x1xf32> -> vector<8x1xf32>
    %64 = vector.broadcast %63 : vector<8x1xf32> to vector<8x8xf32>
    %65 = arith.mulf %60, %64 : vector<8x8xf32>
    %c0_29 = arith.constant 0 : index
    %c1 = arith.constant 1 : index
    %c0_30 = arith.constant 0 : index
    %c0_31 = arith.constant 0 : index
    %66 = vector.load %arg10[%c0_29, %c1, %c0_30, %c0_31] : memref<2x4x8x8xf32, #tpu.memory_space<vmem>>, vector<1x1x8x8xf32>
    %67 = vector.shape_cast %66 : vector<1x1x8x8xf32> to vector<8x8xf32>
    %68 = vector.shape_cast %65 : vector<8x8xf32> to vector<1x1x8x8xf32>
    tpu.vector_store %arg10[%c0_29, %c1, %c0_30, %c0_31], %68 {strides = array<i32>} : memref<2x4x8x8xf32, #tpu.memory_space<vmem>>, vector<1x1x8x8xf32>,
    %69 = arith.truncf %65 : vector<8x8xf32> to vector<8x8xbf16>
    %cst_32 = arith.constant dense<0.000000e+00> : vector<8x8xf32>
    %70 = tpu.matmul %69, %51, %cst_32 {dimension_numbers = #tpu.dot_dimension_numbers<[1], [0], [0], [1], [0, 0, 1, 1], [], []>} : vector<8x8xbf16>, vector<8x8xbf16>, vector<8x8xf32> -> vector<8x8xf32>
    %c0_33 = arith.constant 0 : index
    %c8 = arith.constant 8 : index
    %71 = vector.load %arg11[%c0_33, %c8] : memref<16x32xf32, #tpu.memory_space<vmem>>, vector<8x8xf32>
    tpu.vector_store %arg11[%c0_33, %c8], %70 {strides = array<i32>} : memref<16x32xf32, #tpu.memory_space<vmem>>, vector<8x8xf32>,
    %72 = vector.extract_strided_slice %11 {offsets = [0, 16], sizes = [8, 8], strides = [1, 1]} : vector<16x32xbf16> to vector<8x8xbf16>
    %73 = vector.extract_strided_slice %13 {offsets = [0, 16], sizes = [8, 8], strides = [1, 1]} : vector<16x32xbf16> to vector<8x8xbf16>
    %74 = vector.extract_strided_slice %15 {offsets = [0, 16], sizes = [8, 8], strides = [1, 1]} : vector<16x32xbf16> to vector<8x8xbf16>
    %cst_34 = arith.constant dense<0.000000e+00> : vector<8x8xf32>
    %75 = tpu.matmul %72, %73, %cst_34 {dimension_numbers = #tpu.dot_dimension_numbers<[1], [1], [0], [0], [0, 0, 1, 0], [], []>} : vector<8x8xbf16>, vector<8x8xbf16>, vector<8x8xf32> -> vector<8x8xf32>
    %76 = vector.extract_strided_slice %25 {offsets = [0, 2], sizes = [8, 1], strides = [1, 1]} : vector<16x4xf32> to vector<8x1xf32>
    %77 = vector.broadcast %76 : vector<8x1xf32> to vector<8x8xf32>
    %78 = arith.addf %75, %77 : vector<8x8xf32>
    %cst_35 = arith.constant dense<0xFF800000> : vector<8xf32>
    %79 = vector.multi_reduction <maximumf>, %78, %cst_35 [1] : vector<8x8xf32> to vector<8xf32>
    %80 = vector.shape_cast %79 : vector<8xf32> to vector<8x1xf32>
    %81 = vector.broadcast %80 : vector<8x1xf32> to vector<8x8xf32>
    %82 = arith.subf %78, %81 : vector<8x8xf32>
    %83 = math.exp %82 : vector<8x8xf32>
    %cst_36 = arith.constant dense<0.000000e+00> : vector<8xf32>
    %84 = vector.multi_reduction <add>, %83, %cst_36 [1] : vector<8x8xf32> to vector<8xf32>
    %85 = vector.shape_cast %84 : vector<8xf32> to vector<8x1xf32>
    %86 = tpu.reciprocal %85 {approx = true} : vector<8x1xf32> -> vector<8x1xf32>
    %87 = vector.broadcast %86 : vector<8x1xf32> to vector<8x8xf32>
    %88 = arith.mulf %83, %87 : vector<8x8xf32>
    %c0_37 = arith.constant 0 : index
    %c2 = arith.constant 2 : index
    %c0_38 = arith.constant 0 : index
    %c0_39 = arith.constant 0 : index
    %89 = vector.load %arg10[%c0_37, %c2, %c0_38, %c0_39] : memref<2x4x8x8xf32, #tpu.memory_space<vmem>>, vector<1x1x8x8xf32>
    %90 = vector.shape_cast %89 : vector<1x1x8x8xf32> to vector<8x8xf32>
    %91 = vector.shape_cast %88 : vector<8x8xf32> to vector<1x1x8x8xf32>
    tpu.vector_store %arg10[%c0_37, %c2, %c0_38, %c0_39], %91 {strides = array<i32>} : memref<2x4x8x8xf32, #tpu.memory_space<vmem>>, vector<1x1x8x8xf32>,
    %92 = arith.truncf %88 : vector<8x8xf32> to vector<8x8xbf16>
    %cst_40 = arith.constant dense<0.000000e+00> : vector<8x8xf32>
    %93 = tpu.matmul %92, %74, %cst_40 {dimension_numbers = #tpu.dot_dimension_numbers<[1], [0], [0], [1], [0, 0, 1, 1], [], []>} : vector<8x8xbf16>, vector<8x8xbf16>, vector<8x8xf32> -> vector<8x8xf32>
    %c0_41 = arith.constant 0 : index
    %c16 = arith.constant 16 : index
    %94 = vector.load %arg11[%c0_41, %c16] : memref<16x32xf32, #tpu.memory_space<vmem>>, vector<8x8xf32>
    tpu.vector_store %arg11[%c0_41, %c16], %93 {strides = array<i32>} : memref<16x32xf32, #tpu.memory_space<vmem>>, vector<8x8xf32>,
    %95 = vector.extract_strided_slice %11 {offsets = [0, 24], sizes = [8, 8], strides = [1, 1]} : vector<16x32xbf16> to vector<8x8xbf16>
    %96 = vector.extract_strided_slice %13 {offsets = [0, 24], sizes = [8, 8], strides = [1, 1]} : vector<16x32xbf16> to vector<8x8xbf16>
    %97 = vector.extract_strided_slice %15 {offsets = [0, 24], sizes = [8, 8], strides = [1, 1]} : vector<16x32xbf16> to vector<8x8xbf16>
    %cst_42 = arith.constant dense<0.000000e+00> : vector<8x8xf32>
    %98 = tpu.matmul %95, %96, %cst_42 {dimension_numbers = #tpu.dot_dimension_numbers<[1], [1], [0], [0], [0, 0, 1, 0], [], []>} : vector<8x8xbf16>, vector<8x8xbf16>, vector<8x8xf32> -> vector<8x8xf32>
    %99 = vector.extract_strided_slice %25 {offsets = [0, 3], sizes = [8, 1], strides = [1, 1]} : vector<16x4xf32> to vector<8x1xf32>
    %100 = vector.broadcast %99 : vector<8x1xf32> to vector<8x8xf32>
    %101 = arith.addf %98, %100 : vector<8x8xf32>
    %cst_43 = arith.constant dense<0xFF800000> : vector<8xf32>
    %102 = vector.multi_reduction <maximumf>, %101, %cst_43 [1] : vector<8x8xf32> to vector<8xf32>
    %103 = vector.shape_cast %102 : vector<8xf32> to vector<8x1xf32>
    %104 = vector.broadcast %103 : vector<8x1xf32> to vector<8x8xf32>
    %105 = arith.subf %101, %104 : vector<8x8xf32>
    %106 = math.exp %105 : vector<8x8xf32>
    %cst_44 = arith.constant dense<0.000000e+00> : vector<8xf32>
    %107 = vector.multi_reduction <add>, %106, %cst_44 [1] : vector<8x8xf32> to vector<8xf32>
    %108 = vector.shape_cast %107 : vector<8xf32> to vector<8x1xf32>
    %109 = tpu.reciprocal %108 {approx = true} : vector<8x1xf32> -> vector<8x1xf32>
    %110 = vector.broadcast %109 : vector<8x1xf32> to vector<8x8xf32>
    %111 = arith.mulf %106, %110 : vector<8x8xf32>
    %c0_45 = arith.constant 0 : index
    %c3 = arith.constant 3 : index
    %c0_46 = arith.constant 0 : index
    %c0_47 = arith.constant 0 : index
    %112 = vector.load %arg10[%c0_45, %c3, %c0_46, %c0_47] : memref<2x4x8x8xf32, #tpu.memory_space<vmem>>, vector<1x1x8x8xf32>
    %113 = vector.shape_cast %112 : vector<1x1x8x8xf32> to vector<8x8xf32>
    %114 = vector.shape_cast %111 : vector<8x8xf32> to vector<1x1x8x8xf32>
    tpu.vector_store %arg10[%c0_45, %c3, %c0_46, %c0_47], %114 {strides = array<i32>} : memref<2x4x8x8xf32, #tpu.memory_space<vmem>>, vector<1x1x8x8xf32>,
    %115 = arith.truncf %111 : vector<8x8xf32> to vector<8x8xbf16>
    %cst_48 = arith.constant dense<0.000000e+00> : vector<8x8xf32>
    %116 = tpu.matmul %115, %97, %cst_48 {dimension_numbers = #tpu.dot_dimension_numbers<[1], [0], [0], [1], [0, 0, 1, 1], [], []>} : vector<8x8xbf16>, vector<8x8xbf16>, vector<8x8xf32> -> vector<8x8xf32>
    %c0_49 = arith.constant 0 : index
    %c24 = arith.constant 24 : index
    %117 = vector.load %arg11[%c0_49, %c24] : memref<16x32xf32, #tpu.memory_space<vmem>>, vector<8x8xf32>
    tpu.vector_store %arg11[%c0_49, %c24], %116 {strides = array<i32>} : memref<16x32xf32, #tpu.memory_space<vmem>>, vector<8x8xf32>,
    %118 = vector.extract_strided_slice %11 {offsets = [8, 0], sizes = [8, 8], strides = [1, 1]} : vector<16x32xbf16> to vector<8x8xbf16>
    %119 = vector.extract_strided_slice %13 {offsets = [8, 0], sizes = [8, 8], strides = [1, 1]} : vector<16x32xbf16> to vector<8x8xbf16>
    %120 = vector.extract_strided_slice %15 {offsets = [8, 0], sizes = [8, 8], strides = [1, 1]} : vector<16x32xbf16> to vector<8x8xbf16>
    %cst_50 = arith.constant dense<0.000000e+00> : vector<8x8xf32>
    %121 = tpu.matmul %118, %119, %cst_50 {dimension_numbers = #tpu.dot_dimension_numbers<[1], [1], [0], [0], [0, 0, 1, 0], [], []>} : vector<8x8xbf16>, vector<8x8xbf16>, vector<8x8xf32> -> vector<8x8xf32>
    %122 = vector.extract_strided_slice %25 {offsets = [8, 0], sizes = [8, 1], strides = [1, 1]} : vector<16x4xf32> to vector<8x1xf32>
    %123 = vector.broadcast %122 : vector<8x1xf32> to vector<8x8xf32>
    %124 = arith.addf %121, %123 : vector<8x8xf32>
    %cst_51 = arith.constant dense<0xFF800000> : vector<8xf32>
    %125 = vector.multi_reduction <maximumf>, %124, %cst_51 [1] : vector<8x8xf32> to vector<8xf32>
    %126 = vector.shape_cast %125 : vector<8xf32> to vector<8x1xf32>
    %127 = vector.broadcast %126 : vector<8x1xf32> to vector<8x8xf32>
    %128 = arith.subf %124, %127 : vector<8x8xf32>
    %129 = math.exp %128 : vector<8x8xf32>
    %cst_52 = arith.constant dense<0.000000e+00> : vector<8xf32>
    %130 = vector.multi_reduction <add>, %129, %cst_52 [1] : vector<8x8xf32> to vector<8xf32>
    %131 = vector.shape_cast %130 : vector<8xf32> to vector<8x1xf32>
    %132 = tpu.reciprocal %131 {approx = true} : vector<8x1xf32> -> vector<8x1xf32>
    %133 = vector.broadcast %132 : vector<8x1xf32> to vector<8x8xf32>
    %134 = arith.mulf %129, %133 : vector<8x8xf32>
    %c1_53 = arith.constant 1 : index
    %c0_54 = arith.constant 0 : index
    %c0_55 = arith.constant 0 : index
    %c0_56 = arith.constant 0 : index
    %135 = vector.load %arg10[%c1_53, %c0_54, %c0_55, %c0_56] : memref<2x4x8x8xf32, #tpu.memory_space<vmem>>, vector<1x1x8x8xf32>
    %136 = vector.shape_cast %135 : vector<1x1x8x8xf32> to vector<8x8xf32>
    %137 = vector.shape_cast %134 : vector<8x8xf32> to vector<1x1x8x8xf32>
    tpu.vector_store %arg10[%c1_53, %c0_54, %c0_55, %c0_56], %137 {strides = array<i32>} : memref<2x4x8x8xf32, #tpu.memory_space<vmem>>, vector<1x1x8x8xf32>,
    %138 = arith.truncf %134 : vector<8x8xf32> to vector<8x8xbf16>
    %cst_57 = arith.constant dense<0.000000e+00> : vector<8x8xf32>
    %139 = tpu.matmul %138, %120, %cst_57 {dimension_numbers = #tpu.dot_dimension_numbers<[1], [0], [0], [1], [0, 0, 1, 1], [], []>} : vector<8x8xbf16>, vector<8x8xbf16>, vector<8x8xf32> -> vector<8x8xf32>
    %c8_58 = arith.constant 8 : index
    %c0_59 = arith.constant 0 : index
    %140 = vector.load %arg11[%c8_58, %c0_59] : memref<16x32xf32, #tpu.memory_space<vmem>>, vector<8x8xf32>
    tpu.vector_store %arg11[%c8_58, %c0_59], %139 {strides = array<i32>} : memref<16x32xf32, #tpu.memory_space<vmem>>, vector<8x8xf32>,
    %141 = vector.extract_strided_slice %11 {offsets = [8, 8], sizes = [8, 8], strides = [1, 1]} : vector<16x32xbf16> to vector<8x8xbf16>
    %142 = vector.extract_strided_slice %13 {offsets = [8, 8], sizes = [8, 8], strides = [1, 1]} : vector<16x32xbf16> to vector<8x8xbf16>
    %143 = vector.extract_strided_slice %15 {offsets = [8, 8], sizes = [8, 8], strides = [1, 1]} : vector<16x32xbf16> to vector<8x8xbf16>
    %cst_60 = arith.constant dense<0.000000e+00> : vector<8x8xf32>
    %144 = tpu.matmul %141, %142, %cst_60 {dimension_numbers = #tpu.dot_dimension_numbers<[1], [1], [0], [0], [0, 0, 1, 0], [], []>} : vector<8x8xbf16>, vector<8x8xbf16>, vector<8x8xf32> -> vector<8x8xf32>
    %145 = vector.extract_strided_slice %25 {offsets = [8, 1], sizes = [8, 1], strides = [1, 1]} : vector<16x4xf32> to vector<8x1xf32>
    %146 = vector.broadcast %145 : vector<8x1xf32> to vector<8x8xf32>
    %147 = arith.addf %144, %146 : vector<8x8xf32>
    %cst_61 = arith.constant dense<0xFF800000> : vector<8xf32>
    %148 = vector.multi_reduction <maximumf>, %147, %cst_61 [1] : vector<8x8xf32> to vector<8xf32>
    %149 = vector.shape_cast %148 : vector<8xf32> to vector<8x1xf32>
    %150 = vector.broadcast %149 : vector<8x1xf32> to vector<8x8xf32>
    %151 = arith.subf %147, %150 : vector<8x8xf32>
    %152 = math.exp %151 : vector<8x8xf32>
    %cst_62 = arith.constant dense<0.000000e+00> : vector<8xf32>
    %153 = vector.multi_reduction <add>, %152, %cst_62 [1] : vector<8x8xf32> to vector<8xf32>
    %154 = vector.shape_cast %153 : vector<8xf32> to vector<8x1xf32>
    %155 = tpu.reciprocal %154 {approx = true} : vector<8x1xf32> -> vector<8x1xf32>
    %156 = vector.broadcast %155 : vector<8x1xf32> to vector<8x8xf32>
    %157 = arith.mulf %152, %156 : vector<8x8xf32>
    %c1_63 = arith.constant 1 : index
    %c1_64 = arith.constant 1 : index
    %c0_65 = arith.constant 0 : index
    %c0_66 = arith.constant 0 : index
    %158 = vector.load %arg10[%c1_63, %c1_64, %c0_65, %c0_66] : memref<2x4x8x8xf32, #tpu.memory_space<vmem>>, vector<1x1x8x8xf32>
    %159 = vector.shape_cast %158 : vector<1x1x8x8xf32> to vector<8x8xf32>
    %160 = vector.shape_cast %157 : vector<8x8xf32> to vector<1x1x8x8xf32>
    tpu.vector_store %arg10[%c1_63, %c1_64, %c0_65, %c0_66], %160 {strides = array<i32>} : memref<2x4x8x8xf32, #tpu.memory_space<vmem>>, vector<1x1x8x8xf32>,
    %161 = arith.truncf %157 : vector<8x8xf32> to vector<8x8xbf16>
    %cst_67 = arith.constant dense<0.000000e+00> : vector<8x8xf32>
    %162 = tpu.matmul %161, %143, %cst_67 {dimension_numbers = #tpu.dot_dimension_numbers<[1], [0], [0], [1], [0, 0, 1, 1], [], []>} : vector<8x8xbf16>, vector<8x8xbf16>, vector<8x8xf32> -> vector<8x8xf32>
    %c8_68 = arith.constant 8 : index
    %c8_69 = arith.constant 8 : index
    %163 = vector.load %arg11[%c8_68, %c8_69] : memref<16x32xf32, #tpu.memory_space<vmem>>, vector<8x8xf32>
    tpu.vector_store %arg11[%c8_68, %c8_69], %162 {strides = array<i32>} : memref<16x32xf32, #tpu.memory_space<vmem>>, vector<8x8xf32>,
    %164 = vector.extract_strided_slice %11 {offsets = [8, 16], sizes = [8, 8], strides = [1, 1]} : vector<16x32xbf16> to vector<8x8xbf16>
    %165 = vector.extract_strided_slice %13 {offsets = [8, 16], sizes = [8, 8], strides = [1, 1]} : vector<16x32xbf16> to vector<8x8xbf16>
    %166 = vector.extract_strided_slice %15 {offsets = [8, 16], sizes = [8, 8], strides = [1, 1]} : vector<16x32xbf16> to vector<8x8xbf16>
    %cst_70 = arith.constant dense<0.000000e+00> : vector<8x8xf32>
    %167 = tpu.matmul %164, %165, %cst_70 {dimension_numbers = #tpu.dot_dimension_numbers<[1], [1], [0], [0], [0, 0, 1, 0], [], []>} : vector<8x8xbf16>, vector<8x8xbf16>, vector<8x8xf32> -> vector<8x8xf32>
    %168 = vector.extract_strided_slice %25 {offsets = [8, 2], sizes = [8, 1], strides = [1, 1]} : vector<16x4xf32> to vector<8x1xf32>
    %169 = vector.broadcast %168 : vector<8x1xf32> to vector<8x8xf32>
    %170 = arith.addf %167, %169 : vector<8x8xf32>
    %cst_71 = arith.constant dense<0xFF800000> : vector<8xf32>
    %171 = vector.multi_reduction <maximumf>, %170, %cst_71 [1] : vector<8x8xf32> to vector<8xf32>
    %172 = vector.shape_cast %171 : vector<8xf32> to vector<8x1xf32>
    %173 = vector.broadcast %172 : vector<8x1xf32> to vector<8x8xf32>
    %174 = arith.subf %170, %173 : vector<8x8xf32>
    %175 = math.exp %174 : vector<8x8xf32>
    %cst_72 = arith.constant dense<0.000000e+00> : vector<8xf32>
    %176 = vector.multi_reduction <add>, %175, %cst_72 [1] : vector<8x8xf32> to vector<8xf32>
    %177 = vector.shape_cast %176 : vector<8xf32> to vector<8x1xf32>
    %178 = tpu.reciprocal %177 {approx = true} : vector<8x1xf32> -> vector<8x1xf32>
    %179 = vector.broadcast %178 : vector<8x1xf32> to vector<8x8xf32>
    %180 = arith.mulf %175, %179 : vector<8x8xf32>
    %c1_73 = arith.constant 1 : index
    %c2_74 = arith.constant 2 : index
    %c0_75 = arith.constant 0 : index
    %c0_76 = arith.constant 0 : index
    %181 = vector.load %arg10[%c1_73, %c2_74, %c0_75, %c0_76] : memref<2x4x8x8xf32, #tpu.memory_space<vmem>>, vector<1x1x8x8xf32>
    %182 = vector.shape_cast %181 : vector<1x1x8x8xf32> to vector<8x8xf32>
    %183 = vector.shape_cast %180 : vector<8x8xf32> to vector<1x1x8x8xf32>
    tpu.vector_store %arg10[%c1_73, %c2_74, %c0_75, %c0_76], %183 {strides = array<i32>} : memref<2x4x8x8xf32, #tpu.memory_space<vmem>>, vector<1x1x8x8xf32>,
    %184 = arith.truncf %180 : vector<8x8xf32> to vector<8x8xbf16>
    %cst_77 = arith.constant dense<0.000000e+00> : vector<8x8xf32>
    %185 = tpu.matmul %184, %166, %cst_77 {dimension_numbers = #tpu.dot_dimension_numbers<[1], [0], [0], [1], [0, 0, 1, 1], [], []>} : vector<8x8xbf16>, vector<8x8xbf16>, vector<8x8xf32> -> vector<8x8xf32>
    %c8_78 = arith.constant 8 : index
    %c16_79 = arith.constant 16 : index
    %186 = vector.load %arg11[%c8_78, %c16_79] : memref<16x32xf32, #tpu.memory_space<vmem>>, vector<8x8xf32>
    tpu.vector_store %arg11[%c8_78, %c16_79], %185 {strides = array<i32>} : memref<16x32xf32, #tpu.memory_space<vmem>>, vector<8x8xf32>,
    %187 = vector.extract_strided_slice %11 {offsets = [8, 24], sizes = [8, 8], strides = [1, 1]} : vector<16x32xbf16> to vector<8x8xbf16>
    %188 = vector.extract_strided_slice %13 {offsets = [8, 24], sizes = [8, 8], strides = [1, 1]} : vector<16x32xbf16> to vector<8x8xbf16>
    %189 = vector.extract_strided_slice %15 {offsets = [8, 24], sizes = [8, 8], strides = [1, 1]} : vector<16x32xbf16> to vector<8x8xbf16>
    %cst_80 = arith.constant dense<0.000000e+00> : vector<8x8xf32>
    %190 = tpu.matmul %187, %188, %cst_80 {dimension_numbers = #tpu.dot_dimension_numbers<[1], [1], [0], [0], [0, 0, 1, 0], [], []>} : vector<8x8xbf16>, vector<8x8xbf16>, vector<8x8xf32> -> vector<8x8xf32>
    %191 = vector.extract_strided_slice %25 {offsets = [8, 3], sizes = [8, 1], strides = [1, 1]} : vector<16x4xf32> to vector<8x1xf32>
    %192 = vector.broadcast %191 : vector<8x1xf32> to vector<8x8xf32>
    %193 = arith.addf %190, %192 : vector<8x8xf32>
    %cst_81 = arith.constant dense<0xFF800000> : vector<8xf32>
    %194 = vector.multi_reduction <maximumf>, %193, %cst_81 [1] : vector<8x8xf32> to vector<8xf32>
    %195 = vector.shape_cast %194 : vector<8xf32> to vector<8x1xf32>
    %196 = vector.broadcast %195 : vector<8x1xf32> to vector<8x8xf32>
    %197 = arith.subf %193, %196 : vector<8x8xf32>
    %198 = math.exp %197 : vector<8x8xf32>
    %cst_82 = arith.constant dense<0.000000e+00> : vector<8xf32>
    %199 = vector.multi_reduction <add>, %198, %cst_82 [1] : vector<8x8xf32> to vector<8xf32>
    %200 = vector.shape_cast %199 : vector<8xf32> to vector<8x1xf32>
    %201 = tpu.reciprocal %200 {approx = true} : vector<8x1xf32> -> vector<8x1xf32>
    %202 = vector.broadcast %201 : vector<8x1xf32> to vector<8x8xf32>
    %203 = arith.mulf %198, %202 : vector<8x8xf32>
    %c1_83 = arith.constant 1 : index
    %c3_84 = arith.constant 3 : index
    %c0_85 = arith.constant 0 : index
    %c0_86 = arith.constant 0 : index
    %204 = vector.load %arg10[%c1_83, %c3_84, %c0_85, %c0_86] : memref<2x4x8x8xf32, #tpu.memory_space<vmem>>, vector<1x1x8x8xf32>
    %205 = vector.shape_cast %204 : vector<1x1x8x8xf32> to vector<8x8xf32>
    %206 = vector.shape_cast %203 : vector<8x8xf32> to vector<1x1x8x8xf32>
    tpu.vector_store %arg10[%c1_83, %c3_84, %c0_85, %c0_86], %206 {strides = array<i32>} : memref<2x4x8x8xf32, #tpu.memory_space<vmem>>, vector<1x1x8x8xf32>,
    %207 = arith.truncf %203 : vector<8x8xf32> to vector<8x8xbf16>
    %cst_87 = arith.constant dense<0.000000e+00> : vector<8x8xf32>
    %208 = tpu.matmul %207, %189, %cst_87 {dimension_numbers = #tpu.dot_dimension_numbers<[1], [0], [0], [1], [0, 0, 1, 1], [], []>} : vector<8x8xbf16>, vector<8x8xbf16>, vector<8x8xf32> -> vector<8x8xf32>
    %c8_88 = arith.constant 8 : index
    %c24_89 = arith.constant 24 : index
    %209 = vector.load %arg11[%c8_88, %c24_89] : memref<16x32xf32, #tpu.memory_space<vmem>>, vector<8x8xf32>
    tpu.vector_store %arg11[%c8_88, %c24_89], %208 {strides = array<i32>} : memref<16x32xf32, #tpu.memory_space<vmem>>, vector<8x8xf32>,
    %c0_90 = arith.constant 0 : index
    %c0_91 = arith.constant 0 : index
    %210 = vector.load %arg11[%c0_90, %c0_91] : memref<16x32xf32, #tpu.memory_space<vmem>>, vector<16x32xf32>
    %211 = arith.truncf %210 : vector<16x32xf32> to vector<16x32xbf16>
    %c0_92 = arith.constant 0 : index
    %c0_93 = arith.constant 0 : index
    %212 = vector.load %arg7[%c0_92, %c0_93] : memref<32x32xbf16, #tpu.memory_space<vmem>>, vector<32x32xbf16>
    %cst_94 = arith.constant dense<0.000000e+00> : vector<16x32xf32>
    %213 = tpu.matmul %211, %212, %cst_94 {dimension_numbers = #tpu.dot_dimension_numbers<[1], [0], [0], [1], [0, 0, 1, 1], [], []>} : vector<16x32xbf16>, vector<32x32xbf16>, vector<16x32xf32> -> vector<16x32xf32>
    %c0_95 = arith.constant 0 : index
    %c0_96 = arith.constant 0 : index
    %214 = vector.load %arg8[%c0_95, %c0_96] : memref<1x32xf32, #tpu.memory_space<vmem>>, vector<1x32xf32>
    %215 = vector.broadcast %214 : vector<1x32xf32> to vector<16x32xf32>
    %216 = arith.addf %213, %215 : vector<16x32xf32>
    %217 = vector.shape_cast %216 : vector<16x32xf32> to vector<2x8x32xf32>
    %c0_97 = arith.constant 0 : index
    %c0_98 = arith.constant 0 : index
    %c0_99 = arith.constant 0 : index
    %218 = vector.load %arg9[%c0_97, %c0_98, %c0_99] : memref<2x8x32xf32, #tpu.memory_space<vmem>>, vector<2x8x32xf32>
    tpu.vector_store %arg9[%c0_97, %c0_98, %c0_99], %217 {strides = array<i32>} : memref<2x8x32xf32, #tpu.memory_space<vmem>>, vector<2x8x32xf32>,
    return
  }
  func.func @transform_0(%arg0: i32) -> (i32, i32, i32) {
    %c0_i32 = arith.constant 0 : i32
    %c0_i32_0 = arith.constant 0 : i32
    %c0_i32_1 = arith.constant 0 : i32
    return %arg0, %c0_i32, %c0_i32_0 : i32, i32, i32
  }
  func.func @transform_1(%arg0: i32) -> (i32, i32, i32) {
    %c0_i32 = arith.constant 0 : i32
    %c0_i32_0 = arith.constant 0 : i32
    %c0_i32_1 = arith.constant 0 : i32
    return %arg0, %c0_i32, %c0_i32_0 : i32, i32, i32
  }
  func.func @transform_2(%arg0: i32) -> (i32, i32) {
    %c0_i32 = arith.constant 0 : i32
    %c0_i32_0 = arith.constant 0 : i32
    %c0_i32_1 = arith.constant 0 : i32
    return %c0_i32, %c0_i32_0 : i32, i32
  }
  func.func @transform_3(%arg0: i32) -> (i32, i32) {
    %c0_i32 = arith.constant 0 : i32
    %c0_i32_0 = arith.constant 0 : i32
    %c0_i32_1 = arith.constant 0 : i32
    return %c0_i32, %c0_i32_0 : i32, i32
  }
  func.func @transform_4(%arg0: i32) -> (i32, i32) {
    %c0_i32 = arith.constant 0 : i32
    %c0_i32_0 = arith.constant 0 : i32
    %c0_i32_1 = arith.constant 0 : i32
    return %c0_i32, %c0_i32_0 : i32, i32
  }
  func.func @transform_5(%arg0: i32) -> (i32, i32) {
    %c0_i32 = arith.constant 0 : i32
    %c0_i32_0 = arith.constant 0 : i32
    %c0_i32_1 = arith.constant 0 : i32
    return %c0_i32, %c0_i32_0 : i32, i32
  }
  func.func @transform_6(%arg0: i32) -> (i32, i32) {
    %c0_i32 = arith.constant 0 : i32
    %c0_i32_0 = arith.constant 0 : i32
    %c0_i32_1 = arith.constant 0 : i32
    return %c0_i32, %c0_i32_0 : i32, i32
  }
  func.func @transform_7(%arg0: i32) -> (i32, i32) {
    %c0_i32 = arith.constant 0 : i32
    %c0_i32_0 = arith.constant 0 : i32
    %c0_i32_1 = arith.constant 0 : i32
    return %c0_i32, %c0_i32_0 : i32, i32
  }
  func.func @transform_8(%arg0: i32) -> (i32, i32, i32) {
    %c0_i32 = arith.constant 0 : i32
    %c0_i32_0 = arith.constant 0 : i32
    %c0_i32_1 = arith.constant 0 : i32
    return %arg0, %c0_i32, %c0_i32_0 : i32, i32, i32
  }
  func.func @transform_9(%arg0: i32) -> (i32, i32, i32, i32) {
    %c0_i32 = arith.constant 0 : i32
    %c0_i32_0 = arith.constant 0 : i32
    %c0_i32_1 = arith.constant 0 : i32
    %c0_i32_2 = arith.constant 0 : i32
    return %arg0, %c0_i32, %c0_i32_0, %c0_i32_1 : i32, i32, i32, i32
  }
}

</mosaic_0001>

<bundles_post_ra>
// kernel: tpu_custom_call.1
= control target key start
LH: loop header
LB: loop body
LE: loop exit
PB: predicated region body
PF: predicated region fallthrough
CT: control target
= control target key end

     0   :  { %15 = vsyncpa [#allocation4], 0  ;;  %s2046_s0 = inlined_call_operand.hbm [shape: f32[2,8,32], index: 0, kind: input, shape index: {}]   ;;  %s2047_s1 = inlined_call_operand.hbm [shape: f32[2,8,8], index: 1, kind: input, shape index: {}]   ;;  %s2048_s2 = inlined_call_operand.hbm [shape: bf16[32,96], index: 2, kind: input, shape index: {}]   ;;  %s2049_s3 = inlined_call_operand.vmem [shape: f32[1,96], index: 3, kind: input, shape index: {}]   ;;  %s2050_s4 = inlined_call_operand.vmem [shape: bf16[8,4], index: 4, kind: input, shape index: {}]   ;;  %s2051_s5 = inlined_call_operand.vmem [shape: f32[1,4], index: 5, kind: input, shape index: {}]   ;;  %s2052_s6 = inlined_call_operand.vmem [shape: bf16[32,32], index: 6, kind: input, shape index: {}]   ;;  %s2053_s7 = inlined_call_operand.vmem [shape: f32[1,32], index: 7, kind: input, shape index: {}]   ;;  %s2054_s8 = inlined_call_operand.hbm [shape: f32[2,8,32], index: 8, kind: output, shape index: {0}]   ;;  %s2055_s9 = inlined_call_operand.hbm [shape: f32[2,4,8,8], index: 9, kind: output, shape index: {1}]  }
   0x1   :  { %16 = vsyncpa [#allocation7], 0 }
   0x2   :  { %17 = vsyncpa [#allocation5], 0 }
   0x3   :  { %18 = vsyncpa [#allocation11], 0  ;;  %s1656_s30 = smov [#allocation6]   ;;  %s1657_s11 = smov [#allocation3]  }
   0x4   :  { %s36_s10 = sshll.u32 %s1656_s30, 4  ;;  %s24_s12 = sshll.u32 %s1657_s11, 4  ;;  %s37_s10 = int_to_ptr.vmem [resolvable:$true] %s36_s10  ;;  %s1733_s12 = int_to_ptr.vmem [resolvable:$true] %s24_s12 }
   0x5   :  { %s1538_s15 = scalar_lea.hbm %s2047_s1, 256 }
   0x6   :  { %p1539_p0 = scmp.ne.s32.totalorder %s2047_s1, %s1538_s15  ;;  %p1542_p1 = scmp.lt.u32.totalorder %s1538_s15, %s2047_s1 }
   0x8   :  { %p1544_p2 = pnand %p1542_p1, %p1539_p0 }
   0xa   :  { %1547 = shalt.err (!%p1544_p2)
}
   0xb   :  { %s1548_s20 = scalar_lea.vmem %s37_s10, 256  ;;  %p1553_p4 = scmp.lt.s32.totalorder %s37_s10, %s37_s10 }
   0xc   :  { %p1549_p3 = scmp.ne.s32.totalorder %s37_s10, %s1548_s20  ;;  %p1554_p5 = scmp.lt.s32.totalorder %s1548_s20, %s1548_s20 }
   0xe   :  { %p1555_p6 = por %p1554_p5, %p1553_p4 }
  0x10   :  { %p1556_p7 = pnand %p1555_p6, %p1549_p3 }
  0x12   :  { %1559 = shalt.err (!%p1556_p7)
}
  0x13   :  { %s1658_s21 = smov 128   ;;  %s1659_s22 = smov 8  }
  0x14   :  { %42 = dma.hbm_to_vmem [thread:$0]  %s2047_s1, 256, %s37_s10, [#allocation7], %s1658_s21, %s1658_s21, %s1659_s22  }
  0x15   :  { %s1560_s27 = scalar_lea.hbm %s2046_s0, 256 }
  0x16   :  { %p1561_p8 = scmp.ne.s32.totalorder %s2046_s0, %s1560_s27  ;;  %p1564_p9 = scmp.lt.u32.totalorder %s1560_s27, %s2046_s0 }
  0x18   :  { %p1566_p10 = pnand %p1564_p9, %p1561_p8 }
  0x1a   :  { %1569 = shalt.err (!%p1566_p10)
}
  0x1b   :  { %s1570_s13 = scalar_lea.vmem %s1733_s12, 256  ;;  %p1575_p12 = scmp.lt.s32.totalorder %s1733_s12, %s1733_s12 }
  0x1c   :  { %p1571_p11 = scmp.ne.s32.totalorder %s1733_s12, %s1570_s13  ;;  %p1576_p13 = scmp.lt.s32.totalorder %s1570_s13, %s1570_s13 }
  0x1e   :  { %p1577_p0 = por %p1576_p13, %p1575_p12 }
  0x20   :  { %p1578_p1 = pnand %p1577_p0, %p1571_p11 }
  0x22   :  { %1581 = shalt.err (!%p1578_p1)
}
  0x23   :  { %30 = dma.hbm_to_vmem [thread:$0]  %s2046_s0, 256, %s1733_s12, [#allocation4], %s1658_s21, %s1658_s21, %s1659_s22  }
  0x24   :  { %s1660_s14 = smov [#allocation8]   ;;  %s1582_s18 = scalar_lea.hbm %s2048_s2, 256 }
  0x25   :  { %s48_s15 = sshll.u32 %s1660_s14, 4  ;;  %p1583_p2 = scmp.ne.s32.totalorder %s2048_s2, %s1582_s18  ;;  %s49_s15 = int_to_ptr.vmem [resolvable:$true] %s48_s15 }
  0x26   :  { %p1586_p3 = scmp.lt.u32.totalorder %s1582_s18, %s2048_s2 }
  0x28   :  { %p1588_p4 = pnand %p1586_p3, %p1583_p2 }
  0x2a   :  { %1591 = shalt.err (!%p1588_p4)
}
  0x2b   :  { %s1592_s25 = scalar_lea.vmem %s49_s15, 256  ;;  %p1597_p6 = scmp.lt.s32.totalorder %s49_s15, %s49_s15 }
  0x2c   :  { %p1593_p5 = scmp.ne.s32.totalorder %s49_s15, %s1592_s25  ;;  %p1598_p7 = scmp.lt.s32.totalorder %s1592_s25, %s1592_s25 }
  0x2e   :  { %p1599_p8 = por %p1598_p7, %p1597_p6 }
  0x30   :  { %p1600_p9 = pnand %p1599_p8, %p1593_p5 }
  0x32   :  { %1603 = shalt.err (!%p1600_p9)
}
  0x33   :  { %s1661_s0 = smov 64   ;;  %s1662_s12 = smov 4  }
  0x34   :  { %54 = dma.hbm_to_vmem [thread:$0]  %s2048_s2, 256, %s49_s15, [#allocation7], %s1661_s0, %s1661_s0, %s1662_s12  }
  0x35   :  { %1648 = dma.done.wait [#allocation4], 256  }
  0x36   :  { %1649 = vsyncadd [#allocation4], 4294967040 }
  0x37   :  { %1650 = dma.done.wait [#allocation7], 512  }
  0x38   :  { %1651 = vsyncadd [#allocation7], 4294966784  ;;  %v1663_v0 = vmov 0.0   ;;  %vm1664_vm0 = vmmov 0   ;;  %v1502_v1 = vld [vmem:[#allocation8] sm:$0xff]   ;;  %vm165_vm1 = vcmask 1043456  }
  0x39   :  { %1348 = vmatprep.subr.bf16.mxu0 %v1663_v0  ;;  %1352 = vmatprep.mubr.msk.bf16.mxu0 %vm1664_vm0, %v1663_v0  ;;  %v1503_v2 = vld [vmem:[#allocation8 + $0x8] sm:$0xff]   ;;  %v75_v3 = vld [vmem:[#allocation3] sm:$0xff]  ;;  %v153_v5 = vld [vmem:[%s2050_s4] sm:$0xf]  ;;  %vm161_vm2 = vcmask 64512   ;;  %vm101_vm3 = vcmask 261120  }
  0x3a   :  { %1356 = vmatprep.subr.bf16.mxu1 %v1663_v0  ;;  %1358 = vmatprep.mubr.msk.bf16.mxu1 %vm1664_vm0, %v1663_v0  ;;  %v76_v4 = vld [vmem:[#allocation3 + $0x8] sm:$0xff]  ;;  %v167_v6 = vsel %vm165_vm1, %v153_v5, 0  ;;  %v150_v7 = vld [vmem:[#allocation6] sm:$0xff]  ;;  %v151_v8 = vld [vmem:[#allocation6 + $0x8] sm:$0xff]  ;;  %s1665_s30 = smov 96   ;;  %s1666_s11 = smov 120  }
  0x3b   :  { %1349 = vmatpush3.bf16.msra.mxu0 %v1502_v1  ;;  %1357 = vmatpush3.bf16.msra.mxu1 %v167_v6  ;;  %v152_v9 = vpack.c.bf16 %v151_v8, %v150_v7  ;;  %v77_v10 = vpack.c.bf16 %v76_v4, %v75_v3  ;;  %v1282_v11 = vld [vmem:[%s2049_s3] ss:$0 sm:$0xff]  ;;  %s1667_s13 = smov 88   ;;  %s1668_s3 = smov 80   ;;  %v1672_v27 = vmov 0   ;;  %v1673_v28 = vmov 1  }
  0x3c   :  { %1350 = vmatprep.subr.bf16.mxu0 %v1663_v0  ;;  %1362 = vmatprep.subr.bf16.mxu1 %v1663_v0  ;;  %s1669_s1 = smov 112   ;;  %s1670_s10 = smov 72   ;;  %v1286_v24 = vld [vmem:[%s2051_s5] ss:$0 sm:$0xff]  ;;  %v1674_v34 = vmov 2   ;;  %v1675_v35 = vmov 3  }
  0x3d   :  { %s1671_s14 = smov 104   ;;  %1493 = vset.pattern.permute.xlu0 %v1672_v27  ;;  %1494 = vset.pattern.permute.xlu1 %v1673_v28  ;;  %s1676_s5 = smov 56   ;;  %vm449_vm4 = vcmask 130112   ;;  %vm571_vm5 = vcmask 195712   ;;  %vm693_vm6 = vcmask 261312  }
  0x3e   :  { %1359 = vmatmul.mubr.msk.bf16.vlgmr.msra.gmra.mrb[0].mxu1 %vm161_vm2, %v152_v9  ;;  %s1677_s17 = smov 48   ;;  %s1678_s18 = smov 40  }
  0x3f   :  { %1351 = vmatpush3.bf16.msra.mxu0 %v1503_v2  ;;  %1364 = vmatprep.mubr.msk.bf16.mxu1 %vm1664_vm0, %v1663_v0  ;;  %s1679_s19 = smov 16   ;;  %s1680_s20 = smov 24  }
  0x40   :  { %1368 = vmatprep.subr.bf16.mxu0 %v1663_v0 }
  0x42   :  { %1353 = vmatmul.mubr.msk.bf16.vlgmr.msra.gmra.mrb[0].mxu0 %vm101_vm3, %v77_v10 }
  0x43   :  { %1370 = vmatprep.mubr.msk.bf16.mxu0 %vm1664_vm0, %v1663_v0 }
 0x111   :  { %v203_v25 = vpop.f32.mrb[0].mxu1 }
 0x112   :  { %v204_v26 = vadd.f32 %v1286_v24, %v203_v25  ;;  %v1360_v29 = vpop.f32.mrb[1].mxu1 }
 0x113   :  { %v206_v30 = vpop.f32.mrb[2].mxu1 }
 0x114   :  { %v210_v31 = vmul.f32 0.35355338, %v204_v26  ;;  %v1361_v32 = vpop.f32.mrb[3].mxu1  ;;  %v207_v33 = vadd.f32 %v1286_v24, %v206_v30 }
 0x115   :  { %v139_v12 = vpop.f32.mrb[0].mxu0 }
 0x116   :  { %v140_v13 = vadd.f32 %v1282_v11, %v139_v12  ;;  %v1354_v14 = vpop.f32.mrb[1].mxu0  ;;  %v211_v36 = vmul.f32 0.35355338, %v207_v33 }
 0x117   :  { %v142_v15 = vpop.f32.mrb[2].mxu0 }
 0x118   :  { %v143_v16 = vadd.f32 %v1282_v11, %v142_v15  ;;  %v1355_v17 = vpop.f32.mrb[3].mxu0  ;;  %v146_v18 = vmul.f32 0.35355338, %v140_v13 }
 0x11a   :  { %v147_v19 = vmul.f32 0.35355338, %v143_v16  ;;  %v1806_v20 = vpack.c.bf16 %v143_v16, %v140_v13 }
 0x11c   :  { %v148_v21 = vpack.c.bf16 %v147_v19, %v146_v18  ;;  %218 = vrot.lane.b32.xlu0 %v1806_v20, %s1665_s30  ;;  %v1813_v22 = vrot.slane %v1806_v20, 4 }
 0x11e   :  { %333 = vrot.lane.b32.xlu1 %v148_v21, %s1666_s11  ;;  %v1817_v23 = vrot.slane %v148_v21, 4 }
 0x120   :  { %335 = vrot.lane.b32.xlu0 %v1806_v20, %s1667_s13 }
 0x122   :  { %457 = vrot.lane.b32.xlu1 %v1806_v20, %s1668_s3 }
 0x124   :  { %455 = vrot.lane.b32.xlu0 %v148_v21, %s1669_s1 }
 0x126   :  { %579 = vrot.lane.b32.xlu1 %v1806_v20, %s1670_s10 }
 0x128   :  { %577 = vrot.lane.b32.xlu0 %v148_v21, %s1671_s14 }
 0x12a   :  { %702 = vrot.lane.b32.xlu1 %v1813_v22, %s1665_s30 }
 0x12c   :  { %819 = vrot.lane.b32.xlu0 %v1813_v22, %s1667_s13 }
 0x12e   :  { %817 = vrot.lane.b32.xlu1 %v1817_v23, %s1666_s11 }
 0x130   :  { %940 = vrot.lane.b32.xlu0 %v1813_v22, %s1668_s3 }
 0x132   :  { %938 = vrot.lane.b32.xlu1 %v1817_v23, %s1669_s1 }
 0x134   :  { %1061 = vrot.lane.b32.xlu0 %v1813_v22, %s1670_s10 }
 0x136   :  { %1059 = vrot.lane.b32.xlu1 %v1817_v23, %s1671_s14 }
 0x138   :  { %214 = vperm.xlu0 %1493, %v210_v31  }
 0x13a   :  { %329 = vperm.xlu1 %1494, %v210_v31  }
 0x13c   :  { %1496 = vset.pattern.permute.xlu0 %v1675_v35 }
 0x13d   :  { %574 = vperm.xlu0 %1496, %v210_v31  }
 0x13e   :  { %1495 = vset.pattern.permute.xlu1 %v1674_v34 }
 0x13f   :  { %452 = vperm.xlu1 %1495, %v210_v31  }
 0x141   :  { %1499 = vset.pattern.permute.xlu0 %v1674_v34 }
 0x142   :  { %935 = vperm.xlu0 %1499, %v211_v36  }
 0x143   :  { %1497 = vset.pattern.permute.xlu1 %v1672_v27 }
 0x144   :  { %697 = vperm.xlu1 %1497, %v211_v36  }
 0x146   :  { %1501 = vset.pattern.permute.xlu0 %v1675_v35 }
 0x148   :  { %1498 = vset.pattern.permute.xlu1 %v1673_v28 }
 0x149   :  { %814 = vperm.xlu1 %1498, %v211_v36  }
 0x14d   :  { %1500 = vset.pattern.permute.xlu1 %v1675_v35 }
 0x14e   :  { %1056 = vperm.xlu1 %1500, %v211_v36  }
 0x18e   :  { %v219_v37 = vpop.permute.xlu0 %218 }
 0x18f   :  { %v224_v38 = vsel %vm161_vm2, %v219_v37, 0 }
 0x190   :  { %1363 = vmatpush3.bf16.xpose.msra.mxu1 %v224_v38  ;;  %v334_v40 = vpop.permute.xlu1 %333 }
 0x191   :  { %1374 = vmatprep.subr.bf16.mxu1 %v1663_v0 }
 0x192   :  { %v336_v39 = vpop.permute.xlu0 %335 }
 0x193   :  { %v341_v41 = vsel %vm161_vm2, %v336_v39, 0 }
 0x194   :  { %v458_v42 = vpop.permute.xlu1 %457 }
 0x195   :  { %v463_v43 = vsel %vm161_vm2, %v458_v42, 0 }
 0x196   :  { %v456_v45 = vpop.permute.xlu0 %455 }
 0x197   :  { %1365 = vmatmul.mubr.msk.bf16.vlgmr.msra.gmra.mrb[4].mxu1 %vm161_vm2, %v148_v21 }
 0x198   :  { %1375 = vmatpush3.bf16.xpose.msra.mxu1 %v341_v41  ;;  %1376 = vmatprep.mubr.msk.bf16.mxu1 %vm1664_vm0, %v1663_v0  ;;  %v580_v44 = vpop.permute.xlu1 %579 }
 0x199   :  { %1386 = vmatprep.subr.bf16.mxu1 %v1663_v0  ;;  %v585_v46 = vsel %vm161_vm2, %v580_v44, 0 }
 0x19a   :  { %v578_v48 = vpop.permute.xlu0 %577 }
 0x19c   :  { %v703_v47 = vpop.permute.xlu1 %702 }
 0x19d   :  { %v708_v49 = vsel %vm161_vm2, %v703_v47, 0 }
 0x19e   :  { %v820_v50 = vpop.permute.xlu0 %819 }
 0x19f   :  { %1377 = vmatmul.mubr.msk.bf16.vlgmr.msra.gmra.mrb[8].mxu1 %vm161_vm2, %v334_v40  ;;  %v825_v51 = vsel %vm161_vm2, %v820_v50, 0 }
 0x1a0   :  { %1387 = vmatpush3.bf16.xpose.msra.mxu1 %v463_v43  ;;  %1388 = vmatprep.mubr.msk.bf16.mxu1 %vm1664_vm0, %v1663_v0  ;;  %v818_v53 = vpop.permute.xlu1 %817 }
 0x1a1   :  { %1398 = vmatprep.subr.bf16.mxu1 %v1663_v0 }
 0x1a2   :  { %v941_v52 = vpop.permute.xlu0 %940 }
 0x1a3   :  { %v946_v54 = vsel %vm161_vm2, %v941_v52, 0 }
 0x1a4   :  { %v939_v56 = vpop.permute.xlu1 %938 }
 0x1a6   :  { %v1062_v55 = vpop.permute.xlu0 %1061 }
 0x1a7   :  { %1389 = vmatmul.mubr.msk.bf16.vlgmr.msra.gmra.mrb[12].mxu1 %vm161_vm2, %v456_v45  ;;  %v1067_v57 = vsel %vm161_vm2, %v1062_v55, 0 }
 0x1a8   :  { %1399 = vmatpush3.bf16.xpose.msra.mxu1 %v585_v46  ;;  %1400 = vmatprep.mubr.msk.bf16.mxu1 %vm1664_vm0, %v1663_v0  ;;  %v1060_v58 = vpop.permute.xlu1 %1059 }
 0x1a9   :  { %1410 = vmatprep.subr.bf16.mxu1 %v1663_v0 }
 0x1af   :  { %1401 = vmatmul.mubr.msk.bf16.vlgmr.msra.gmra.mrb[16].mxu1 %vm161_vm2, %v578_v48 }
 0x1b0   :  { %1411 = vmatpush3.bf16.xpose.msra.mxu1 %v708_v49  ;;  %1412 = vmatprep.mubr.msk.bf16.mxu1 %vm1664_vm0, %v1663_v0 }
 0x1b1   :  { %1422 = vmatprep.subr.bf16.mxu1 %v1663_v0 }
 0x1b7   :  { %1413 = vmatmul.mubr.msk.bf16.vlgmr.msra.gmra.mrb[20].mxu1 %vm161_vm2, %v1817_v23  ;;  %v215_v59 = vpop.permute.xlu0 %214 }
 0x1b8   :  { %1423 = vmatpush3.bf16.xpose.msra.mxu1 %v825_v51  ;;  %1424 = vmatprep.mubr.msk.bf16.mxu1 %vm1664_vm0, %v1663_v0 }
 0x1b9   :  { %1434 = vmatprep.subr.bf16.mxu1 %v1663_v0  ;;  %v330_v3 = vpop.permute.xlu1 %329 }
 0x1bc   :  { %v575_v17 = vpop.permute.xlu0 %574 }
 0x1be   :  { %v453_v10 = vpop.permute.xlu1 %452 }
 0x1bf   :  { %1425 = vmatmul.mubr.msk.bf16.vlgmr.msra.gmra.mrb[24].mxu1 %vm161_vm2, %v818_v53 }
 0x1c0   :  { %1435 = vmatpush3.bf16.xpose.msra.mxu1 %v946_v54  ;;  %1436 = vmatprep.mubr.msk.bf16.mxu1 %vm1664_vm0, %v1663_v0 }
 0x1c1   :  { %1446 = vmatprep.subr.bf16.mxu1 %v1663_v0  ;;  %v936_v40 = vpop.permute.xlu0 %935 }
 0x1c3   :  { %v698_v26 = vpop.permute.xlu1 %697 }
 0x1c7   :  { %1437 = vmatmul.mubr.msk.bf16.vlgmr.msra.gmra.mrb[28].mxu1 %vm161_vm2, %v939_v56 }
 0x1c8   :  { %1447 = vmatpush3.bf16.xpose.msra.mxu1 %v1067_v57  ;;  %1448 = vmatprep.mubr.msk.bf16.mxu1 %vm1664_vm0, %v1663_v0  ;;  %v815_v33 = vpop.permute.xlu1 %814 }
 0x1c9   :  { %1458 = vmatprep.subr.bf16.mxu1 %v1663_v0 }
 0x1cd   :  { %v1057_v51 = vpop.permute.xlu1 %1056 }
 0x1cf   :  { %1449 = vmatmul.mubr.msk.bf16.vlgmr.msra.gmra.mrb[32].mxu1 %vm161_vm2, %v1060_v58 }
 0x1d0   :  { %1462 = vmatprep.mubr.msk.bf16.mxu1 %vm1664_vm0, %v1663_v0 }
 0x26a   :  { %v260_v60 = vpop.f32.mrb[4].mxu1 }
 0x26b   :  { %v1868_v61 = vadd.f32 %v260_v60, %v215_v59  ;;  %v1366_v62 = vpop.f32.mrb[5].mxu1 }
 0x26c   :  { %v263_v63 = vpop.f32.mrb[6].mxu1 }
 0x26d   :  { %v1367_v1 = vpop.f32.mrb[7].mxu1  ;;  %v266_v2 = vsel %vm161_vm2, %v1868_v61, -inf }
 0x26e   :  { %267 = vmax.xlane.f32.xlu1 %v266_v2 }
 0x272   :  { %v377_v4 = vpop.f32.mrb[8].mxu1 }
 0x273   :  { %v1872_v5 = vadd.f32 %v377_v4, %v330_v3  ;;  %v1378_v6 = vpop.f32.mrb[9].mxu1 }
 0x274   :  { %v380_v7 = vpop.f32.mrb[10].mxu1 }
 0x275   :  { %v1379_v8 = vpop.f32.mrb[11].mxu1  ;;  %v383_v9 = vsel %vm161_vm2, %v1872_v5, -inf }
 0x276   :  { %384 = vmax.xlane.f32.xlu0 %v383_v9 }
 0x27a   :  { %v499_v11 = vpop.f32.mrb[12].mxu1 }
 0x27b   :  { %v1876_v12 = vadd.f32 %v499_v11, %v453_v10  ;;  %v1390_v13 = vpop.f32.mrb[13].mxu1 }
 0x27c   :  { %v502_v14 = vpop.f32.mrb[14].mxu1 }
 0x27d   :  { %v1391_v15 = vpop.f32.mrb[15].mxu1  ;;  %v505_v16 = vsel %vm161_vm2, %v1876_v12, -inf }
 0x27e   :  { %506 = vmax.xlane.f32.xlu0 %v505_v16 }
 0x282   :  { %v621_v18 = vpop.f32.mrb[16].mxu1 }
 0x283   :  { %v1880_v19 = vadd.f32 %v621_v18, %v575_v17  ;;  %v1402_v21 = vpop.f32.mrb[17].mxu1 }
 0x284   :  { %v624_v23 = vpop.f32.mrb[18].mxu1 }
 0x285   :  { %v1403_v24 = vpop.f32.mrb[19].mxu1  ;;  %v627_v25 = vsel %vm161_vm2, %v1880_v19, -inf }
 0x286   :  { %628 = vmax.xlane.f32.xlu1 %v627_v25 }
 0x28a   :  { %v744_v27 = vpop.f32.mrb[20].mxu1 }
 0x28b   :  { %v745_v28 = vadd.f32 %v744_v27, %v698_v26  ;;  %v1414_v29 = vpop.f32.mrb[21].mxu1 }
 0x28c   :  { %v747_v30 = vpop.f32.mrb[22].mxu1 }
 0x28d   :  { %v1415_v31 = vpop.f32.mrb[23].mxu1  ;;  %v750_v32 = vsel %vm161_vm2, %v745_v28, -inf }
 0x28e   :  { %751 = vmax.xlane.f32.xlu0 %v750_v32 }
 0x292   :  { %v861_v34 = vpop.f32.mrb[24].mxu1 }
 0x293   :  { %v1885_v35 = vadd.f32 %v861_v34, %v815_v33  ;;  %v1426_v36 = vpop.f32.mrb[25].mxu1 }
 0x294   :  { %v864_v37 = vpop.f32.mrb[26].mxu1 }
 0x295   :  { %v1427_v38 = vpop.f32.mrb[27].mxu1  ;;  %v867_v39 = vsel %vm161_vm2, %v1885_v35, -inf }
 0x296   :  { %868 = vmax.xlane.f32.xlu1 %v867_v39 }
 0x29a   :  { %v982_v41 = vpop.f32.mrb[28].mxu1 }
 0x29b   :  { %v983_v42 = vadd.f32 %v982_v41, %v936_v40  ;;  %v1438_v43 = vpop.f32.mrb[29].mxu1 }
 0x29c   :  { %v985_v44 = vpop.f32.mrb[30].mxu1 }
 0x29d   :  { %v1439_v45 = vpop.f32.mrb[31].mxu1  ;;  %v988_v46 = vsel %vm161_vm2, %v983_v42, -inf }
 0x29e   :  { %989 = vmax.xlane.f32.xlu0 %v988_v46 }
 0x2a2   :  { %v1103_v47 = vpop.f32.mrb[32].mxu1 }
 0x2a3   :  { %v1450_v48 = vpop.f32.mrb[33].mxu1  ;;  %v1894_v52 = vadd.f32 %v1103_v47, %v1057_v51 }
 0x2a4   :  { %v1106_v49 = vpop.f32.mrb[34].mxu1 }
 0x2a5   :  { %v1451_v50 = vpop.f32.mrb[35].mxu1  ;;  %v1109_v53 = vsel %vm161_vm2, %v1894_v52, -inf }
 0x2a7   :  { %397 = vrot.lane.b32.xlu1 %v1806_v20, %s1676_s5 }
 0x2b4   :  { %279 = vrot.lane.b32.xlu0 %v1806_v20, %s1661_s0 }
 0x2cb   :  { %1110 = vmax.xlane.f32.xlu1 %v1109_v53 }
 0x2dc   :  { %519 = vrot.lane.b32.xlu1 %v1806_v20, %s1677_s17 }
 0x2fb   :  { %v268_v54 = vpop.xlane.xlu1 %267 }
 0x2fc   :  { %v269_v55 = vsub.f32 %v1868_v61, %v268_v54 }
 0x2fe   :  { %v270_v56 = vmul.f32 1.442695, %v269_v55 }
 0x300   :  { %1506 = vpow2.f32 %v270_v56 }
 0x303   :  { %v385_v57 = vpop.xlane.xlu0 %384 }
 0x304   :  { %v386_v58 = vsub.f32 %v1872_v5, %v385_v57 }
 0x306   :  { %v387_v59 = vmul.f32 1.442695, %v386_v58 }
 0x308   :  { %1508 = vpow2.f32 %v387_v59 }
 0x30a   :  { %v1902_v60 = vpop.eup %1506 }
 0x30b   :  { %v507_v62 = vpop.xlane.xlu0 %506  ;;  %v272_v63 = vsel %vm161_vm2, %v1902_v60, 0.0 }
 0x30c   :  { %v508_v1 = vsub.f32 %v1876_v12, %v507_v62  ;;  %273 = vadd.xlane.f32.xlu0 %v272_v63 }
 0x30e   :  { %v509_v2 = vmul.f32 1.442695, %v508_v1 }
 0x310   :  { %1510 = vpow2.f32 %v509_v2 }
 0x312   :  { %v1907_v3 = vpop.eup %1508 }
 0x313   :  { %v629_v61 = vpop.xlane.xlu1 %628  ;;  %v389_v4 = vsel %vm161_vm2, %v1907_v3, 0.0 }
 0x314   :  { %v630_v5 = vsub.f32 %v1880_v19, %v629_v61  ;;  %390 = vadd.xlane.f32.xlu1 %v389_v4 }
 0x316   :  { %v631_v6 = vmul.f32 1.442695, %v630_v5 }
 0x318   :  { %1512 = vpow2.f32 %v631_v6 }
 0x31a   :  { %v1912_v7 = vpop.eup %1510 }
 0x31b   :  { %v752_v8 = vpop.xlane.xlu0 %751  ;;  %v511_v9 = vsel %vm161_vm2, %v1912_v7, 0.0 }
 0x31c   :  { %v753_v10 = vsub.f32 %v745_v28, %v752_v8  ;;  %512 = vadd.xlane.f32.xlu0 %v511_v9 }
 0x31e   :  { %v754_v11 = vmul.f32 1.442695, %v753_v10 }
 0x320   :  { %1514 = vpow2.f32 %v754_v11 }
 0x322   :  { %v1916_v12 = vpop.eup %1512 }
 0x323   :  { %v633_v13 = vsel %vm161_vm2, %v1916_v12, 0.0  ;;  %v869_v23 = vpop.xlane.xlu1 %868 }
 0x324   :  { %634 = vadd.xlane.f32.xlu1 %v633_v13  ;;  %v870_v25 = vsub.f32 %v1885_v35, %v869_v23 }
 0x326   :  { %v871_v27 = vmul.f32 1.442695, %v870_v25 }
 0x32a   :  { %v1920_v14 = vpop.eup %1514 }
 0x32b   :  { %v990_v15 = vpop.xlane.xlu0 %989  ;;  %v756_v16 = vsel %vm161_vm2, %v1920_v14, 0.0 }
 0x32c   :  { %v991_v17 = vsub.f32 %v983_v42, %v990_v15  ;;  %757 = vadd.xlane.f32.xlu1 %v756_v16 }
 0x32e   :  { %v992_v18 = vmul.f32 1.442695, %v991_v17 }
 0x32f   :  { %v280_v19 = vpop.permute.xlu0 %279 }
 0x330   :  { %1516 = vpow2.f32 %v992_v18  ;;  %v285_v21 = vsel %vm165_vm1, %v280_v19, 0 }
 0x331   :  { %1369 = vmatpush3.bf16.msra.mxu0 %v285_v21  ;;  %1518 = vpow2.f32 %v871_v27 }
 0x332   :  { %641 = vrot.lane.b32.xlu0 %v1806_v20, %s1678_s18  ;;  %1380 = vmatprep.subr.bf16.mxu0 %v1663_v0  ;;  %v398_v20 = vpop.permute.xlu1 %397 }
 0x333   :  { %v403_v41 = vsel %vm165_vm1, %v398_v20, 0 }
 0x33a   :  { %v1927_v24 = vpop.eup %1516 }
 0x33b   :  { %v994_v26 = vsel %vm161_vm2, %v1927_v24, 0.0  ;;  %v1932_v28 = vpop.eup %1518 }
 0x33c   :  { %995 = vadd.xlane.f32.xlu1 %v994_v26  ;;  %v873_v29 = vsel %vm161_vm2, %v1932_v28, 0.0 }
 0x351   :  { %874 = vadd.xlane.f32.xlu0 %v873_v29 }
 0x358   :  { %v1111_v30 = vpop.xlane.xlu1 %1110 }
 0x359   :  { %v1112_v31 = vsub.f32 %v1894_v52, %v1111_v30 }
 0x35b   :  { %v1113_v32 = vmul.f32 1.442695, %v1112_v31 }
 0x35c   :  { %v520_v36 = vpop.permute.xlu1 %519 }
 0x35d   :  { %1520 = vpow2.f32 %v1113_v32  ;;  %v525_v45 = vsel %vm165_vm1, %v520_v36, 0 }
 0x367   :  { %v1937_v33 = vpop.eup %1520  ;;  %881 = vrot.lane.b32.xlu0 %v1813_v22, %s1676_s5 }
 0x368   :  { %v1115_v34 = vsel %vm161_vm2, %v1937_v33, 0.0 }
 0x369   :  { %1116 = vadd.xlane.f32.xlu1 %v1115_v34 }
 0x36b   :  { %1002 = vrot.lane.b32.xlu0 %v1813_v22, %s1677_s17 }
 0x36f   :  { %1123 = vrot.lane.b32.xlu0 %v1813_v22, %s1678_s18 }
 0x37a   :  { %764 = vrot.lane.b32.xlu1 %v1813_v22, %s1661_s0 }
 0x399   :  { %v274_v35 = vpop.xlane.xlu0 %273 }
 0x39a   :  { %1522 = vrcp.f32 %v274_v35 }
 0x3a1   :  { %v391_v37 = vpop.xlane.xlu1 %390 }
 0x3a2   :  { %1524 = vrcp.f32 %v391_v37 }
 0x3a4   :  { %v1523_v38 = vpop.eup %1522 }
 0x3a5   :  { %v276_v39 = vmul.f32 %v1523_v38, %v1902_v60 }
 0x3a7   :  { %277 = vst.msk [vmem:[#allocation10] sm:$0xff] %vm161_vm2, %v276_v39  ;;  %v278_v40 = vpack.c.bf16 %v276_v39, %v276_v39 }
 0x3a9   :  { %1371 = vmatmul.mubr.msk.bf16.vlgmr.msra.gmra.mrb[4].mxu0 %vm161_vm2, %v278_v40  ;;  %v513_v42 = vpop.xlane.xlu0 %512 }
 0x3aa   :  { %1381 = vmatpush3.bf16.msra.mxu0 %v403_v41  ;;  %1526 = vrcp.f32 %v513_v42  ;;  %1382 = vmatprep.mubr.msk.bf16.mxu0 %vm1664_vm0, %v1663_v0  ;;  %v1504_v41 = vld [vmem:[%s2052_s6] sm:$0xff]   ;;  %v1505_v42 = vld [vmem:[%s2052_s6 + $0x8] sm:$0xff]   ;;  %s1681_s6 = smov [#allocation10]  }
 0x3ab   :  { %1392 = vmatprep.subr.bf16.mxu0 %v1663_v0  ;;  %1459 = vmatpush3.bf16.msra.mxu1 %v1504_v41  ;;  %s1265_s12 = sshll.u32 %s1681_s6, 4  ;;  %s1266_s12 = int_to_ptr.vmem [resolvable:$true] %s1265_s12 }
 0x3ac   :  { %v1525_v22 = vpop.eup %1524  ;;  %1460 = vmatprep.subr.bf16.mxu1 %v1663_v0  ;;  %s1604_s26 = scalar_lea.vmem %s1266_s12, 1024  ;;  %p1609_p11 = scmp.lt.s32.totalorder %s1266_s12, %s1266_s12 }
 0x3ad   :  { %v393_v43 = vmul.f32 %v1525_v22, %v1907_v3  ;;  %v642_v49 = vpop.permute.xlu0 %641  ;;  %p1605_p10 = scmp.ne.s32.totalorder %s1266_s12, %s1604_s26  ;;  %p1610_p12 = scmp.lt.s32.totalorder %s1604_s26, %s1604_s26 }
 0x3ae   :  { %v647_v51 = vsel %vm165_vm1, %v642_v49, 0 }
 0x3af   :  { %395 = vst.msk [vmem:[#allocation10 + $0x8] sm:$0xff] %vm161_vm2, %v393_v43  ;;  %v396_v44 = vpack.c.bf16 %v393_v43, %v393_v43  ;;  %1461 = vmatpush3.bf16.msra.mxu1 %v1505_v42  ;;  %p1611_p13 = por %p1610_p12, %p1609_p11 }
 0x3b1   :  { %1383 = vmatmul.mubr.msk.bf16.vlgmr.msra.gmra.mrb[8].mxu0 %vm161_vm2, %v396_v44  ;;  %v635_v46 = vpop.xlane.xlu1 %634  ;;  %p1612_p0 = pnand %p1611_p13, %p1605_p10 }
 0x3b2   :  { %1393 = vmatpush3.bf16.msra.mxu0 %v525_v45  ;;  %1528 = vrcp.f32 %v635_v46  ;;  %1394 = vmatprep.mubr.msk.bf16.mxu0 %vm1664_vm0, %v1663_v0 }
 0x3b3   :  { %1404 = vmatprep.subr.bf16.mxu0 %v1663_v0 }
 0x3b4   :  { %v1527_v47 = vpop.eup %1526 }
 0x3b5   :  { %v515_v48 = vmul.f32 %v1527_v47, %v1912_v7 }
 0x3b7   :  { %517 = vst.msk [vmem:[#allocation10 + $0x10] sm:$0xff] %vm161_vm2, %v515_v48  ;;  %v518_v50 = vpack.c.bf16 %v515_v48, %v515_v48 }
 0x3b9   :  { %1395 = vmatmul.mubr.msk.bf16.vlgmr.msra.gmra.mrb[12].mxu0 %vm161_vm2, %v518_v50  ;;  %v758_v52 = vpop.xlane.xlu1 %757 }
 0x3ba   :  { %1405 = vmatpush3.bf16.msra.mxu0 %v647_v51  ;;  %1530 = vrcp.f32 %v758_v52  ;;  %1406 = vmatprep.mubr.msk.bf16.mxu0 %vm1664_vm0, %v1663_v0 }
 0x3bb   :  { %1416 = vmatprep.subr.bf16.mxu0 %v1663_v0 }
 0x3bc   :  { %v1529_v53 = vpop.eup %1528 }
 0x3bd   :  { %v637_v54 = vmul.f32 %v1529_v53, %v1916_v12 }
 0x3bf   :  { %639 = vst.msk [vmem:[#allocation10 + $0x18] sm:$0xff] %vm161_vm2, %v637_v54  ;;  %v640_v55 = vpack.c.bf16 %v637_v54, %v637_v54 }
 0x3c1   :  { %1407 = vmatmul.mubr.msk.bf16.vlgmr.msra.gmra.mrb[16].mxu0 %vm161_vm2, %v640_v55 }
 0x3c2   :  { %1418 = vmatprep.mubr.msk.bf16.mxu0 %vm1664_vm0, %v1663_v0 }
 0x3c4   :  { %v1531_v56 = vpop.eup %1530 }
 0x3c5   :  { %v760_v57 = vmul.f32 %v1531_v56, %v1920_v14 }
 0x3c7   :  { %762 = vst.msk [vmem:[#allocation10 + $0x20] sm:$0xff] %vm161_vm2, %v760_v57  ;;  %v763_v5 = vpack.c.bf16 %v760_v57, %v760_v57 }
 0x3c9   :  { %v996_v58 = vpop.xlane.xlu1 %995 }
 0x3ca   :  { %1532 = vrcp.f32 %v996_v58 }
 0x3d4   :  { %v1533_v59 = vpop.eup %1532 }
 0x3d5   :  { %v998_v60 = vmul.f32 %v1533_v59, %v1927_v24 }
 0x3d7   :  { %1000 = vst.msk [vmem:[#allocation10 + $0x30] sm:$0xff] %vm161_vm2, %v998_v60  ;;  %v1001_v13 = vpack.c.bf16 %v998_v60, %v998_v60 }
 0x3de   :  { %v875_v62 = vpop.xlane.xlu0 %874 }
 0x3df   :  { %1534 = vrcp.f32 %v875_v62 }
 0x3e2   :  { %v882_v4 = vpop.permute.xlu0 %881 }
 0x3e3   :  { %v887_v6 = vsel %vm165_vm1, %v882_v4, 0 }
 0x3e6   :  { %v1003_v9 = vpop.permute.xlu0 %1002 }
 0x3e7   :  { %v1008_v11 = vsel %vm165_vm1, %v1003_v9, 0 }
 0x3e9   :  { %v1535_v63 = vpop.eup %1534 }
 0x3ea   :  { %v877_v1 = vmul.f32 %v1535_v63, %v1932_v28  ;;  %v1124_v12 = vpop.permute.xlu0 %1123 }
 0x3eb   :  { %v1129_v14 = vsel %vm165_vm1, %v1124_v12, 0 }
 0x3ec   :  { %879 = vst.msk [vmem:[#allocation10 + $0x28] sm:$0xff] %vm161_vm2, %v877_v1  ;;  %v880_v10 = vpack.c.bf16 %v877_v1, %v877_v1 }
 0x3f6   :  { %v1117_v2 = vpop.xlane.xlu1 %1116 }
 0x3f7   :  { %1536 = vrcp.f32 %v1117_v2 }
 0x3fa   :  { %v765_v3 = vpop.permute.xlu1 %764 }
 0x3fb   :  { %v770_v61 = vsel %vm165_vm1, %v765_v3, 0 }
 0x3fc   :  { %1417 = vmatpush3.bf16.msra.mxu0 %v770_v61 }
 0x3fd   :  { %1428 = vmatprep.subr.bf16.mxu0 %v1663_v0 }
 0x3ff   :  { %1419 = vmatmul.mubr.msk.bf16.vlgmr.msra.gmra.mrb[20].mxu0 %vm161_vm2, %v763_v5 }
 0x400   :  { %1429 = vmatpush3.bf16.msra.mxu0 %v887_v6  ;;  %1430 = vmatprep.mubr.msk.bf16.mxu0 %vm1664_vm0, %v1663_v0 }
 0x401   :  { %v1537_v7 = vpop.eup %1536  ;;  %1440 = vmatprep.subr.bf16.mxu0 %v1663_v0 }
 0x402   :  { %v1119_v8 = vmul.f32 %v1537_v7, %v1937_v33 }
 0x404   :  { %1121 = vst.msk [vmem:[#allocation10 + $0x38] sm:$0xff] %vm161_vm2, %v1119_v8  ;;  %v1122_v15 = vpack.c.bf16 %v1119_v8, %v1119_v8 }
 0x407   :  { %1431 = vmatmul.mubr.msk.bf16.vlgmr.msra.gmra.mrb[24].mxu0 %vm161_vm2, %v880_v10 }
 0x408   :  { %1441 = vmatpush3.bf16.msra.mxu0 %v1008_v11  ;;  %1442 = vmatprep.mubr.msk.bf16.mxu0 %vm1664_vm0, %v1663_v0 }
 0x409   :  { %1452 = vmatprep.subr.bf16.mxu0 %v1663_v0 }
 0x40f   :  { %1443 = vmatmul.mubr.msk.bf16.vlgmr.msra.gmra.mrb[28].mxu0 %vm161_vm2, %v1001_v13 }
 0x410   :  { %1453 = vmatpush3.bf16.msra.mxu0 %v1129_v14  ;;  %1454 = vmatprep.mubr.msk.bf16.mxu0 %vm1664_vm0, %v1663_v0 }
 0x417   :  { %1455 = vmatmul.mubr.msk.bf16.vlgmr.msra.gmra.mrb[32].mxu0 %vm161_vm2, %v1122_v15 }
 0x47c   :  { %v321_v16 = vpop.f32.mrb[4].mxu0 }
 0x47d   :  { %327 = vst.msk [vmem:[#allocation2] sm:$0xff] %vm161_vm2, %v321_v16  ;;  %v1372_v17 = vpop.f32.mrb[5].mxu0 }
 0x47e   :  { %v324_v18 = vpop.f32.mrb[6].mxu0 }
 0x47f   :  { %v1373_v19 = vpop.f32.mrb[7].mxu0 }
 0x484   :  { %v439_v21 = vpop.f32.mrb[8].mxu0 }
 0x485   :  { %446 = vrot.lane.b32.xlu1 %v439_v21, %s1659_s22  ;;  %v1384_v23 = vpop.f32.mrb[9].mxu0 }
 0x486   :  { %v442_v24 = vpop.f32.mrb[10].mxu0 }
 0x487   :  { %v1385_v25 = vpop.f32.mrb[11].mxu0 }
 0x48c   :  { %v561_v26 = vpop.f32.mrb[12].mxu0 }
 0x48d   :  { %568 = vrot.lane.b32.xlu1 %v561_v26, %s1679_s19  ;;  %v1396_v27 = vpop.f32.mrb[13].mxu0 }
 0x48e   :  { %v564_v28 = vpop.f32.mrb[14].mxu0 }
 0x48f   :  { %v1397_v29 = vpop.f32.mrb[15].mxu0 }
 0x494   :  { %v683_v20 = vpop.f32.mrb[16].mxu0 }
 0x495   :  { %690 = vrot.lane.b32.xlu1 %v683_v20, %s1680_s20  ;;  %v1408_v30 = vpop.f32.mrb[17].mxu0 }
 0x496   :  { %v686_v31 = vpop.f32.mrb[18].mxu0 }
 0x497   :  { %v1409_v32 = vpop.f32.mrb[19].mxu0 }
 0x4d2   :  { %v806_v33 = vpop.f32.mrb[20].mxu0 }
 0x4d3   :  { %812 = vst.msk [vmem:[#allocation2 + $0x8] sm:$0xff] %vm161_vm2, %v806_v33  ;;  %v1420_v34 = vpop.f32.mrb[21].mxu0 }
 0x4d4   :  { %v809_v35 = vpop.f32.mrb[22].mxu0 }
 0x4d5   :  { %v1421_v36 = vpop.f32.mrb[23].mxu0 }
 0x4da   :  { %v923_v37 = vpop.f32.mrb[24].mxu0 }
 0x4db   :  { %930 = vrot.lane.b32.xlu0 %v923_v37, %s1659_s22  ;;  %v1432_v38 = vpop.f32.mrb[25].mxu0 }
 0x4dc   :  { %v926_v39 = vpop.f32.mrb[26].mxu0 }
 0x4dd   :  { %v1433_v40 = vpop.f32.mrb[27].mxu0 }
 0x4e2   :  { %v1044_v22 = vpop.f32.mrb[28].mxu0 }
 0x4e3   :  { %1051 = vrot.lane.b32.xlu0 %v1044_v22, %s1679_s19  ;;  %v1444_v43 = vpop.f32.mrb[29].mxu0 }
 0x4e4   :  { %v1047_v44 = vpop.f32.mrb[30].mxu0 }
 0x4e5   :  { %v1445_v45 = vpop.f32.mrb[31].mxu0 }
 0x4ea   :  { %v1165_v46 = vpop.f32.mrb[32].mxu0 }
 0x4eb   :  { %1172 = vrot.lane.b32.xlu0 %v1165_v46, %s1680_s20  ;;  %v1456_v47 = vpop.f32.mrb[33].mxu0 }
 0x4ec   :  { %v1168_v48 = vpop.f32.mrb[34].mxu0 }
 0x4ed   :  { %v1457_v49 = vpop.f32.mrb[35].mxu0 }
 0x4f7   :  { %v447_v50 = vpop.permute.xlu1 %446 }
 0x4f8   :  { %450 = vst.msk [vmem:[#allocation2] sm:$0xff] %vm449_vm4, %v447_v50 }
 0x4ff   :  { %v569_v51 = vpop.permute.xlu1 %568 }
 0x500   :  { %572 = vst.msk [vmem:[#allocation2] sm:$0xff] %vm571_vm5, %v569_v51 }
 0x507   :  { %v691_v52 = vpop.permute.xlu1 %690 }
 0x508   :  { %694 = vst.msk [vmem:[#allocation2] sm:$0xff] %vm693_vm6, %v691_v52 }
 0x50f   :  { %v1176_v55 = vld [vmem:[#allocation2] sm:$0xff] }
 0x54d   :  { %v931_v0 = vpop.permute.xlu0 %930 }
 0x54e   :  { %933 = vst.msk [vmem:[#allocation2 + $0x8] sm:$0xff] %vm449_vm4, %v931_v0 }
 0x555   :  { %v1052_v53 = vpop.permute.xlu0 %1051 }
 0x556   :  { %1054 = vst.msk [vmem:[#allocation2 + $0x8] sm:$0xff] %vm571_vm5, %v1052_v53 }
 0x55d   :  { %v1173_v54 = vpop.permute.xlu0 %1172 }
 0x55e   :  { %1175 = vst.msk [vmem:[#allocation2 + $0x8] sm:$0xff] %vm693_vm6, %v1173_v54 }
 0x565   :  { %v1177_v56 = vld [vmem:[#allocation2 + $0x8] sm:$0xff] }
 0x566   :  { %v1178_v57 = vpack.c.bf16 %v1177_v56, %v1176_v55 }
 0x568   :  { %1463 = vmatmul.mubr.msk.bf16.vlgmr.msra.gmra.mrb[36].mxu1 %vm101_vm3, %v1178_v57 }
 0x569   :  { %1615 = shalt.err (!%p1612_p0)
}
 0x56a   :  { %s1616_s28 = scalar_lea.hbm %s2055_s9, 1024 }
 0x56b   :  { %p1617_p1 = scmp.ne.s32.totalorder %s2055_s9, %s1616_s28  ;;  %p1620_p2 = scmp.lt.u32.totalorder %s1616_s28, %s2055_s9 }
 0x56d   :  { %p1622_p3 = pnand %p1620_p2, %p1617_p1 }
 0x56f   :  { %1625 = shalt.err (!%p1622_p3)
}
 0x570   :  { %1271 = dma.vmem_to_hbm [thread:$0]  %s1266_s12, 1024, %s2055_s9, [#allocation11], %s1658_s21, %s1658_s21, %s1659_s22  }
 0x571   :  { %v1304_v58 = vld [vmem:[%s2053_s7] ss:$0 sm:$0xff]  ;;  %s1682_s14 = smov [#allocation9]  }
 0x572   :  { %s1253_s15 = sshll.u32 %s1682_s14, 4  ;;  %s1254_s15 = int_to_ptr.vmem [resolvable:$true] %s1253_s15 }
 0x573   :  { %s1626_s16 = scalar_lea.vmem %s1254_s15, 256  ;;  %p1631_p5 = scmp.lt.s32.totalorder %s1254_s15, %s1254_s15 }
 0x574   :  { %p1627_p4 = scmp.ne.s32.totalorder %s1254_s15, %s1626_s16  ;;  %p1632_p6 = scmp.lt.s32.totalorder %s1626_s16, %s1626_s16 }
 0x576   :  { %p1633_p7 = por %p1632_p6, %p1631_p5 }
 0x578   :  { %p1634_p8 = pnand %p1633_p7, %p1627_p4 }
 0x63b   :  { %v1239_v59 = vpop.f32.mrb[36].mxu1 }
 0x63c   :  { %v1240_v60 = vadd.f32 %v1304_v58, %v1239_v59  ;;  %v1464_v62 = vpop.f32.mrb[37].mxu1 }
 0x63d   :  { %v1242_v63 = vpop.f32.mrb[38].mxu1 }
 0x63e   :  { %1246 = vst.msk [vmem:[#allocation9] sm:$0xff] %vm101_vm3, %v1240_v60  ;;  %v1243_v1 = vadd.f32 %v1304_v58, %v1242_v63  ;;  %v1465_v2 = vpop.f32.mrb[39].mxu1 }
 0x640   :  { %1247 = vst.msk [vmem:[#allocation9 + $0x8] sm:$0xff] %vm101_vm3, %v1243_v1 }
 0x641   :  { %1637 = shalt.err (!%p1634_p8)
}
 0x642   :  { %s1638_s5 = scalar_lea.hbm %s2054_s8, 256 }
 0x643   :  { %p1639_p9 = scmp.ne.s32.totalorder %s2054_s8, %s1638_s5  ;;  %p1642_p10 = scmp.lt.u32.totalorder %s1638_s5, %s2054_s8 }
 0x645   :  { %p1644_p11 = pnand %p1642_p10, %p1639_p9 }
 0x647   :  { %1647 = shalt.err (!%p1644_p11)
}
 0x648   :  { %1259 = dma.vmem_to_hbm [thread:$0]  %s1254_s15, 256, %s2054_s8, [#allocation5], %s1658_s21, %s1658_s21, %s1659_s22  }
 0x649   :  { %1652 = dma.done.wait [#allocation5], 256  }
 0x64a   :  { %1653 = vsyncadd [#allocation5], 4294967040 }
 0x64b   :  { %1654 = dma.done.wait [#allocation11], 1024  }
 0x64c   :  { %1655 = vsyncadd [#allocation11], 4294966272 }
 0x64d   :  { %1278 = vsyncpa [#allocation4], 1 }
 0x64e   :  { %1279 = vsyncpa [#allocation7], 1 }
 0x64f   :  { %1280 = vsyncpa [#allocation5], 1 }
 0x650   :  { %1281 = vsyncpa [#allocation11], 1 }

</bundles_post_ra>
